<compile_context>
chip_gen: v7x
topology: tpu7x:2x2x1
jax: 0.10.0
libtpu: 0.0.40
codegen_flags: <defaults>
</compile_context>

<pallas_src>
import functools

import jax
import jax.numpy as jnp
from jax.experimental import pallas as pl
from jax.experimental.pallas import tpu as pltpu

EPS = 1e-5  # PyTorch nn.LayerNorm default eps


def _layer_norm(y, gamma, beta):
    mu = jnp.mean(y, axis=-1, keepdims=True)
    var = jnp.mean((y - mu) ** 2, axis=-1, keepdims=True)
    return (y - mu) * jax.lax.rsqrt(var + EPS) * gamma + beta


def transformer_block_kernel(
    x_ref,                      # (B*S, E) f32 activation slab
    wq_ref, bq_ref,             # (E, E) bf16 (scale pre-folded), (1, E) f32
    wk_ref, bk_ref,             # (E, E) bf16, (1, E) f32
    wv_ref, bv_ref,             # (E, E) bf16, (1, E) f32
    wo_ref, bo_ref,             # (E, E) bf16, (1, E) f32
    g1_ref, bt1_ref,            # (1, E) f32 norm1 gamma / beta
    wf1_ref, bf1_ref,           # (E, F) bf16, (1, F) f32
    wf2_ref, bf2_ref,           # (F, E) bf16, (1, E) f32
    g2_ref, bt2_ref,            # (1, E) f32 norm2 gamma / beta
    o_ref,                      # (B*S, E)
    *, batch, seq, num_heads,
):
    B, S, H = batch, seq, num_heads
    BS, E = x_ref.shape
    hd = E // H

    x_f32 = x_ref[...]                         # f32 residual / LayerNorm path
    x_bf = x_f32.astype(jnp.bfloat16)          # bf16 operand for the MXU

    # ---- Q/K/V projections: three (BS,E)x(E,E) bf16 matmuls, f32 accum -----
    # (1/sqrt(hd) is already folded into wq/bq by prepare_params.)
    q = jnp.dot(x_bf, wq_ref[...], preferred_element_type=jnp.float32) + bq_ref[...]
    k = jnp.dot(x_bf, wk_ref[...], preferred_element_type=jnp.float32) + bk_ref[...]
    v = jnp.dot(x_bf, wv_ref[...], preferred_element_type=jnp.float32) + bv_ref[...]

    # ---- head-major relayout: (BS, E) -> (B*H, S, hd) -----------------------
    def to_heads(t):
        return (t.astype(jnp.bfloat16)
                .reshape(B, S, H, hd)
                .transpose(0, 2, 1, 3)
                .reshape(B * H, S, hd))

    qh, kh, vh = to_heads(q), to_heads(k), to_heads(v)

    # ---- batched attention (all batches & heads in one dot_general each) ----
    scores = jnp.einsum('bqd,bkd->bqk', qh, kh,
                        preferred_element_type=jnp.float32)     # (B*H, S, S)
    scores = scores - jnp.max(scores, axis=-1, keepdims=True)
    p = jnp.exp(scores)                                          # f32 softmax
    p = p / jnp.sum(p, axis=-1, keepdims=True)                   # exact divide

    oh = jnp.einsum('bqk,bkd->bqd', p.astype(jnp.bfloat16), vh,
                    preferred_element_type=jnp.float32)          # (B*H, S, hd)

    attn_in = (oh.reshape(B, H, S, hd)
               .transpose(0, 2, 1, 3)
               .reshape(BS, E)
               .astype(jnp.bfloat16))

    # ---- output projection ---------------------------------------------------
    attn = jnp.dot(attn_in, wo_ref[...],
                   preferred_element_type=jnp.float32) + bo_ref[...]

    # ---- residual + norm1 (f32) ----------------------------------------------
    y1 = _layer_norm(x_f32 + attn, g1_ref[...], bt1_ref[...])

    # ---- feed-forward (bf16 matmuls, f32 accumulation) -----------------------
    h1 = jnp.dot(y1.astype(jnp.bfloat16), wf1_ref[...],
                 preferred_element_type=jnp.float32) + bf1_ref[...]
    h1 = jnp.maximum(h1, 0.0)
    ff = jnp.dot(h1.astype(jnp.bfloat16), wf2_ref[...],
                 preferred_element_type=jnp.float32) + bf2_ref[...]

    # ---- residual + norm2 (f32) ----------------------------------------------
    y2 = _layer_norm(y1 + ff, g2_ref[...], bt2_ref[...])
    o_ref[...] = y2.astype(o_ref.dtype)


def prepare_params(params, num_heads):
    """One-time weight preparation (do this OUTSIDE the per-step hot path):
    transpose to (in, out), cast matmul weights to bf16, split in_proj into
    Q/K/V, and fold the 1/sqrt(head_dim) attention scale into Q weight/bias."""
    E = params['g1'].shape[0]
    hd = E // num_heads
    scale = 1.0 / float(hd) ** 0.5

    row = lambda v: v.reshape(1, -1).astype(jnp.float32)
    bf = lambda w: w.T.astype(jnp.bfloat16)          # (out,in) -> (in,out) bf16

    w_in, b_in = params['w_in'], params['b_in']      # (3E, E), (3E,)
    w_q, w_k, w_v = w_in[:E], w_in[E:2 * E], w_in[2 * E:]
    b_q, b_k, b_v = b_in[:E], b_in[E:2 * E], b_in[2 * E:]

    return {
        'w_q': bf(w_q * scale), 'b_q': row(b_q * scale),
        'w_k': bf(w_k), 'b_k': row(b_k),
        'w_v': bf(w_v), 'b_v': row(b_v),
        'w_out': bf(params['w_out']), 'b_out': row(params['b_out']),
        'g1': row(params['g1']), 'bt1': row(params['bt1']),
        'w_ff1': bf(params['w_ff1']), 'b_ff1': row(params['b_ff1']),
        'w_ff2': bf(params['w_ff2']), 'b_ff2': row(params['b_ff2']),
        'g2': row(params['g2']), 'bt2': row(params['bt2']),
    }


def transformer_block(x_sbe, prepared, num_heads):
    """x_sbe: (S, B, E) f32 — PyTorch nn.MultiheadAttention default layout."""
    S, B, E = x_sbe.shape
    BS = B * S
    F = prepared['w_ff1'].shape[1]

    # Fold batch into the row dimension; keep f32 (kernel casts to bf16 only
    # for MXU operands, so residual/LayerNorm see full-precision activations).
    x_rows = jnp.transpose(x_sbe, (1, 0, 2)).reshape(BS, E).astype(jnp.float32)

    args = (
        x_rows,
        prepared['w_q'], prepared['b_q'],
        prepared['w_k'], prepared['b_k'],
        prepared['w_v'], prepared['b_v'],
        prepared['w_out'], prepared['b_out'],
        prepared['g1'], prepared['bt1'],
        prepared['w_ff1'], prepared['b_ff1'],
        prepared['w_ff2'], prepared['b_ff2'],
        prepared['g2'], prepared['bt2'],
    )

    # Explicit VMEM budget: operands + output, with headroom for intermediates
    # (scores, FFN activation, relayouts), clamped to sane bounds.
    in_bytes = sum(int(a.size) * a.dtype.itemsize for a in args)
    out_bytes = BS * E * 4
    vmem_limit = int(min(128 * 1024 * 1024,
                         max(16 * 1024 * 1024, 8 * (in_bytes + out_bytes))))

    flops = 2 * BS * (4 * E * E + 2 * S * E + 2 * E * F)
    cost = pl.CostEstimate(flops=flops,
                           transcendentals=B * num_heads * S * S,
                           bytes_accessed=in_bytes + out_bytes)

    vmem_spec = pl.BlockSpec(memory_space=pltpu.MemorySpace.VMEM)

    out_rows = pl.pallas_call(
        functools.partial(transformer_block_kernel,
                          batch=B, seq=S, num_heads=num_heads),
        out_shape=jax.ShapeDtypeStruct((BS, E), jnp.float32),
        in_specs=[vmem_spec] * len(args),
        out_specs=vmem_spec,
        compiler_params=pltpu.CompilerParams(vmem_limit_bytes=vmem_limit),
        cost_estimate=cost,
    )(*args)

    return jnp.transpose(out_rows.reshape(B, S, E), (1, 0, 2)).astype(x_sbe.dtype)


# ---------------- pure-JAX reference (for correctness check) ----------------
def reference_bse(x, p, H):
    B, S, E = x.shape
    hd = E // H
    x2 = x.reshape(B * S, E)
    qkv = x2 @ p['w_in'].T + p['b_in']
    q, k, v = jnp.split(qkv, 3, axis=-1)
    heads = lambda t: t.reshape(B, S, H, hd).transpose(0, 2, 1, 3)
    qh, kh, vh = heads(q), heads(k), heads(v)
    scores = jnp.einsum('bhid,bhjd->bhij', qh, kh) / jnp.sqrt(hd)
    pm = jax.nn.softmax(scores, axis=-1)
    o = jnp.einsum('bhij,bhjd->bhid', pm, vh).transpose(0, 2, 1, 3).reshape(B * S, E)
    attn = o @ p['w_out'].T + p['b_out']
    y1 = _layer_norm(x2 + attn, p['g1'], p['bt1'])
    h1 = jnp.maximum(y1 @ p['w_ff1'].T + p['b_ff1'], 0.0)
    ff = h1 @ p['w_ff2'].T + p['b_ff2']
    y2 = _layer_norm(y1 + ff, p['g2'], p['bt2'])
    return y2.reshape(B, S, E)


def init_params(key, embed_dim, ff_dim):
    ks = jax.random.split(key, 6)
    s = 0.05
    return {
        # PyTorch-convention shapes (out_features, in_features)
        'w_in': jax.random.normal(ks[0], (3 * embed_dim, embed_dim), jnp.float32) * s,
        'b_in': jax.random.normal(ks[1], (3 * embed_dim,), jnp.float32) * s,
        'w_out': jax.random.normal(ks[2], (embed_dim, embed_dim), jnp.float32) * s,
        'b_out': jnp.zeros((embed_dim,), jnp.float32),
        'g1': jnp.ones((embed_dim,), jnp.float32),
        'bt1': jnp.zeros((embed_dim,), jnp.float32),
        'w_ff1': jax.random.normal(ks[3], (ff_dim, embed_dim), jnp.float32) * s,
        'b_ff1': jax.random.normal(ks[4], (ff_dim,), jnp.float32) * s,
        'w_ff2': jax.random.normal(ks[5], (embed_dim, ff_dim), jnp.float32) * s,
        'b_ff2': jnp.zeros((embed_dim,), jnp.float32),
        'g2': jnp.ones((embed_dim,), jnp.float32),
        'bt2': jnp.zeros((embed_dim,), jnp.float32),
    }


if __name__ == "__main__":
    SEQ, BATCH, EMBED, HEADS, FF = 8, 2, 32, 8, 64

    key = jax.random.PRNGKey(0)
    kx, kp = jax.random.split(key)
    x = jax.random.normal(kx, (SEQ, BATCH, EMBED), jnp.float32)   # (S, B, E)
    params = init_params(kp, EMBED, FF)

    # One-time weight preparation (outside the per-call hot path).
    prepared = prepare_params(params, HEADS)

    out = transformer_block(x, prepared, HEADS)
    out = jax.block_until_ready(out)

    ref = jnp.transpose(
        reference_bse(jnp.transpose(x, (1, 0, 2)), params, HEADS), (1, 0, 2))
    assert out.shape == (SEQ, BATCH, EMBED)
    # bf16 operands on the matmul path -> loosened tolerance vs f32 reference.
    assert jnp.allclose(out, ref, atol=2e-2, rtol=2e-2), "mismatch vs reference"

    print("KERNEL_OK")
</pallas_src>

<mosaic_0001>
module attributes {stable_mosaic.version = 11 : i64} {
  func.func @transformer_block_kernel(%arg0: memref<16x32xf32, #tpu.memory_space<vmem>>, %arg1: memref<32x32xbf16, #tpu.memory_space<vmem>>, %arg2: memref<1x32xf32, #tpu.memory_space<vmem>>, %arg3: memref<32x32xbf16, #tpu.memory_space<vmem>>, %arg4: memref<1x32xf32, #tpu.memory_space<vmem>>, %arg5: memref<32x32xbf16, #tpu.memory_space<vmem>>, %arg6: memref<1x32xf32, #tpu.memory_space<vmem>>, %arg7: memref<32x32xbf16, #tpu.memory_space<vmem>>, %arg8: memref<1x32xf32, #tpu.memory_space<vmem>>, %arg9: memref<1x32xf32, #tpu.memory_space<vmem>>, %arg10: memref<1x32xf32, #tpu.memory_space<vmem>>, %arg11: memref<32x64xbf16, #tpu.memory_space<vmem>>, %arg12: memref<1x64xf32, #tpu.memory_space<vmem>>, %arg13: memref<64x32xbf16, #tpu.memory_space<vmem>>, %arg14: memref<1x32xf32, #tpu.memory_space<vmem>>, %arg15: memref<1x32xf32, #tpu.memory_space<vmem>>, %arg16: memref<1x32xf32, #tpu.memory_space<vmem>>, %arg17: memref<16x32xf32, #tpu.memory_space<vmem>>) attributes {dimension_semantics = [], scalar_prefetch = 0 : i64, scratch_operands = 0 : i64, tpu.core_type = #tpu.core_type<tc>} {
    %c0 = arith.constant 0 : index
    %c0_0 = arith.constant 0 : index
    %0 = vector.load %arg0[%c0, %c0_0] : memref<16x32xf32, #tpu.memory_space<vmem>>, vector<16x32xf32>
    %1 = arith.truncf %0 : vector<16x32xf32> to vector<16x32xbf16>
    %c0_1 = arith.constant 0 : index
    %c0_2 = arith.constant 0 : index
    %2 = vector.load %arg1[%c0_1, %c0_2] : memref<32x32xbf16, #tpu.memory_space<vmem>>, vector<32x32xbf16>
    %cst = arith.constant dense<0.000000e+00> : vector<16x32xf32>
    %3 = tpu.matmul %1, %2, %cst {dimension_numbers = #tpu.dot_dimension_numbers<[1], [0], [0], [1], [0, 0, 1, 1], [], []>} : vector<16x32xbf16>, vector<32x32xbf16>, vector<16x32xf32> -> vector<16x32xf32>
    %c0_3 = arith.constant 0 : index
    %c0_4 = arith.constant 0 : index
    %4 = vector.load %arg2[%c0_3, %c0_4] : memref<1x32xf32, #tpu.memory_space<vmem>>, vector<1x32xf32>
    %5 = vector.broadcast %4 : vector<1x32xf32> to vector<16x32xf32>
    %6 = arith.addf %3, %5 : vector<16x32xf32>
    %c0_5 = arith.constant 0 : index
    %c0_6 = arith.constant 0 : index
    %7 = vector.load %arg3[%c0_5, %c0_6] : memref<32x32xbf16, #tpu.memory_space<vmem>>, vector<32x32xbf16>
    %cst_7 = arith.constant dense<0.000000e+00> : vector<16x32xf32>
    %8 = tpu.matmul %1, %7, %cst_7 {dimension_numbers = #tpu.dot_dimension_numbers<[1], [0], [0], [1], [0, 0, 1, 1], [], []>} : vector<16x32xbf16>, vector<32x32xbf16>, vector<16x32xf32> -> vector<16x32xf32>
    %c0_8 = arith.constant 0 : index
    %c0_9 = arith.constant 0 : index
    %9 = vector.load %arg4[%c0_8, %c0_9] : memref<1x32xf32, #tpu.memory_space<vmem>>, vector<1x32xf32>
    %10 = vector.broadcast %9 : vector<1x32xf32> to vector<16x32xf32>
    %11 = arith.addf %8, %10 : vector<16x32xf32>
    %c0_10 = arith.constant 0 : index
    %c0_11 = arith.constant 0 : index
    %12 = vector.load %arg5[%c0_10, %c0_11] : memref<32x32xbf16, #tpu.memory_space<vmem>>, vector<32x32xbf16>
    %cst_12 = arith.constant dense<0.000000e+00> : vector<16x32xf32>
    %13 = tpu.matmul %1, %12, %cst_12 {dimension_numbers = #tpu.dot_dimension_numbers<[1], [0], [0], [1], [0, 0, 1, 1], [], []>} : vector<16x32xbf16>, vector<32x32xbf16>, vector<16x32xf32> -> vector<16x32xf32>
    %c0_13 = arith.constant 0 : index
    %c0_14 = arith.constant 0 : index
    %14 = vector.load %arg6[%c0_13, %c0_14] : memref<1x32xf32, #tpu.memory_space<vmem>>, vector<1x32xf32>
    %15 = vector.broadcast %14 : vector<1x32xf32> to vector<16x32xf32>
    %16 = arith.addf %13, %15 : vector<16x32xf32>
    %17 = arith.truncf %6 : vector<16x32xf32> to vector<16x32xbf16>
    %18 = vector.shape_cast %17 : vector<16x32xbf16> to vector<2x8x8x4xbf16>
    %19 = tpu.transpose %18, [0, 2, 1, 3] : vector<2x8x8x4xbf16> -> vector<2x8x8x4xbf16>
    %20 = vector.shape_cast %19 : vector<2x8x8x4xbf16> to vector<16x8x4xbf16>
    %21 = arith.truncf %11 : vector<16x32xf32> to vector<16x32xbf16>
    %22 = vector.shape_cast %21 : vector<16x32xbf16> to vector<2x8x8x4xbf16>
    %23 = tpu.transpose %22, [0, 2, 1, 3] : vector<2x8x8x4xbf16> -> vector<2x8x8x4xbf16>
    %24 = vector.shape_cast %23 : vector<2x8x8x4xbf16> to vector<16x8x4xbf16>
    %25 = arith.truncf %16 : vector<16x32xf32> to vector<16x32xbf16>
    %26 = vector.shape_cast %25 : vector<16x32xbf16> to vector<2x8x8x4xbf16>
    %27 = tpu.transpose %26, [0, 2, 1, 3] : vector<2x8x8x4xbf16> -> vector<2x8x8x4xbf16>
    %28 = vector.shape_cast %27 : vector<2x8x8x4xbf16> to vector<16x8x4xbf16>
    "tpu.trace_start"() <{level = 10 : i32, message = "bqd,bkd->bqk"}> : () -> ()
    %cst_15 = arith.constant dense<0.000000e+00> : vector<16x8x8xf32>
    %29 = tpu.matmul %20, %24, %cst_15 {dimension_numbers = #tpu.dot_dimension_numbers<[2], [2], [1], [1], [0, 0, 0, 1, 1, 1], [0], [0]>} : vector<16x8x4xbf16>, vector<16x8x4xbf16>, vector<16x8x8xf32> -> vector<16x8x8xf32>
    "tpu.trace_stop"() : () -> ()
    %cst_16 = arith.constant dense<0xFF800000> : vector<16x8xf32>
    %30 = vector.multi_reduction <maximumf>, %29, %cst_16 [2] : vector<16x8x8xf32> to vector<16x8xf32>
    %31 = vector.shape_cast %30 : vector<16x8xf32> to vector<16x8x1xf32>
    %32 = vector.broadcast %31 : vector<16x8x1xf32> to vector<16x8x8xf32>
    %33 = arith.subf %29, %32 : vector<16x8x8xf32>
    %34 = math.exp %33 : vector<16x8x8xf32>
    %cst_17 = arith.constant dense<0.000000e+00> : vector<16x8xf32>
    %35 = vector.multi_reduction <add>, %34, %cst_17 [2] : vector<16x8x8xf32> to vector<16x8xf32>
    %36 = vector.shape_cast %35 : vector<16x8xf32> to vector<16x8x1xf32>
    %37 = vector.broadcast %36 : vector<16x8x1xf32> to vector<16x8x8xf32>
    %38 = arith.divf %34, %37 : vector<16x8x8xf32>
    %39 = arith.truncf %38 : vector<16x8x8xf32> to vector<16x8x8xbf16>
    "tpu.trace_start"() <{level = 10 : i32, message = "bqk,bkd->bqd"}> : () -> ()
    %cst_18 = arith.constant dense<0.000000e+00> : vector<16x8x4xf32>
    %40 = tpu.matmul %39, %28, %cst_18 {dimension_numbers = #tpu.dot_dimension_numbers<[2], [1], [1], [2], [0, 0, 0, 1, 1, 2], [0], [0]>} : vector<16x8x8xbf16>, vector<16x8x4xbf16>, vector<16x8x4xf32> -> vector<16x8x4xf32>
    "tpu.trace_stop"() : () -> ()
    %41 = vector.shape_cast %40 : vector<16x8x4xf32> to vector<2x8x8x4xf32>
    %42 = tpu.transpose %41, [0, 2, 1, 3] : vector<2x8x8x4xf32> -> vector<2x8x8x4xf32>
    %43 = vector.shape_cast %42 : vector<2x8x8x4xf32> to vector<16x32xf32>
    %44 = arith.truncf %43 : vector<16x32xf32> to vector<16x32xbf16>
    %c0_19 = arith.constant 0 : index
    %c0_20 = arith.constant 0 : index
    %45 = vector.load %arg7[%c0_19, %c0_20] : memref<32x32xbf16, #tpu.memory_space<vmem>>, vector<32x32xbf16>
    %cst_21 = arith.constant dense<0.000000e+00> : vector<16x32xf32>
    %46 = tpu.matmul %44, %45, %cst_21 {dimension_numbers = #tpu.dot_dimension_numbers<[1], [0], [0], [1], [0, 0, 1, 1], [], []>} : vector<16x32xbf16>, vector<32x32xbf16>, vector<16x32xf32> -> vector<16x32xf32>
    %c0_22 = arith.constant 0 : index
    %c0_23 = arith.constant 0 : index
    %47 = vector.load %arg8[%c0_22, %c0_23] : memref<1x32xf32, #tpu.memory_space<vmem>>, vector<1x32xf32>
    %48 = vector.broadcast %47 : vector<1x32xf32> to vector<16x32xf32>
    %49 = arith.addf %46, %48 : vector<16x32xf32>
    %50 = arith.addf %0, %49 : vector<16x32xf32>
    %c0_24 = arith.constant 0 : index
    %c0_25 = arith.constant 0 : index
    %51 = vector.load %arg9[%c0_24, %c0_25] : memref<1x32xf32, #tpu.memory_space<vmem>>, vector<1x32xf32>
    %c0_26 = arith.constant 0 : index
    %c0_27 = arith.constant 0 : index
    %52 = vector.load %arg10[%c0_26, %c0_27] : memref<1x32xf32, #tpu.memory_space<vmem>>, vector<1x32xf32>
    %cst_28 = arith.constant dense<0.000000e+00> : vector<16xf32>
    %53 = vector.multi_reduction <add>, %50, %cst_28 [1] : vector<16x32xf32> to vector<16xf32>
    %54 = vector.shape_cast %53 : vector<16xf32> to vector<16x1xf32>
    %cst_29 = arith.constant 3.200000e+01 : f32
    %55 = vector.broadcast %cst_29 : f32 to vector<16x1xf32>
    %56 = arith.divf %54, %55 : vector<16x1xf32>
    %57 = vector.broadcast %56 : vector<16x1xf32> to vector<16x32xf32>
    %58 = arith.subf %50, %57 : vector<16x32xf32>
    %59 = arith.mulf %58, %58 : vector<16x32xf32>
    %cst_30 = arith.constant dense<0.000000e+00> : vector<16xf32>
    %60 = vector.multi_reduction <add>, %59, %cst_30 [1] : vector<16x32xf32> to vector<16xf32>
    %61 = vector.shape_cast %60 : vector<16xf32> to vector<16x1xf32>
    %cst_31 = arith.constant 3.200000e+01 : f32
    %62 = vector.broadcast %cst_31 : f32 to vector<16x1xf32>
    %63 = arith.divf %61, %62 : vector<16x1xf32>
    %64 = vector.broadcast %56 : vector<16x1xf32> to vector<16x32xf32>
    %65 = arith.subf %50, %64 : vector<16x32xf32>
    %cst_32 = arith.constant 9.99999974E-6 : f32
    %66 = vector.broadcast %cst_32 : f32 to vector<16x1xf32>
    %67 = arith.addf %63, %66 : vector<16x1xf32>
    %68 = math.rsqrt %67 : vector<16x1xf32>
    %69 = vector.broadcast %68 : vector<16x1xf32> to vector<16x32xf32>
    %70 = arith.mulf %65, %69 : vector<16x32xf32>
    %71 = vector.broadcast %51 : vector<1x32xf32> to vector<16x32xf32>
    %72 = arith.mulf %70, %71 : vector<16x32xf32>
    %73 = vector.broadcast %52 : vector<1x32xf32> to vector<16x32xf32>
    %74 = arith.addf %72, %73 : vector<16x32xf32>
    %75 = arith.truncf %74 : vector<16x32xf32> to vector<16x32xbf16>
    %c0_33 = arith.constant 0 : index
    %c0_34 = arith.constant 0 : index
    %76 = vector.load %arg11[%c0_33, %c0_34] : memref<32x64xbf16, #tpu.memory_space<vmem>>, vector<32x64xbf16>
    %cst_35 = arith.constant dense<0.000000e+00> : vector<16x64xf32>
    %77 = tpu.matmul %75, %76, %cst_35 {dimension_numbers = #tpu.dot_dimension_numbers<[1], [0], [0], [1], [0, 0, 1, 1], [], []>} : vector<16x32xbf16>, vector<32x64xbf16>, vector<16x64xf32> -> vector<16x64xf32>
    %c0_36 = arith.constant 0 : index
    %c0_37 = arith.constant 0 : index
    %78 = vector.load %arg12[%c0_36, %c0_37] : memref<1x64xf32, #tpu.memory_space<vmem>>, vector<1x64xf32>
    %79 = vector.broadcast %78 : vector<1x64xf32> to vector<16x64xf32>
    %80 = arith.addf %77, %79 : vector<16x64xf32>
    %cst_38 = arith.constant 0.000000e+00 : f32
    %81 = vector.broadcast %cst_38 : f32 to vector<16x64xf32>
    %82 = arith.maximumf %80, %81 : vector<16x64xf32>
    %83 = arith.truncf %82 : vector<16x64xf32> to vector<16x64xbf16>
    %c0_39 = arith.constant 0 : index
    %c0_40 = arith.constant 0 : index
    %84 = vector.load %arg13[%c0_39, %c0_40] : memref<64x32xbf16, #tpu.memory_space<vmem>>, vector<64x32xbf16>
    %cst_41 = arith.constant dense<0.000000e+00> : vector<16x32xf32>
    %85 = tpu.matmul %83, %84, %cst_41 {dimension_numbers = #tpu.dot_dimension_numbers<[1], [0], [0], [1], [0, 0, 1, 1], [], []>} : vector<16x64xbf16>, vector<64x32xbf16>, vector<16x32xf32> -> vector<16x32xf32>
    %c0_42 = arith.constant 0 : index
    %c0_43 = arith.constant 0 : index
    %86 = vector.load %arg14[%c0_42, %c0_43] : memref<1x32xf32, #tpu.memory_space<vmem>>, vector<1x32xf32>
    %87 = vector.broadcast %86 : vector<1x32xf32> to vector<16x32xf32>
    %88 = arith.addf %85, %87 : vector<16x32xf32>
    %89 = arith.addf %74, %88 : vector<16x32xf32>
    %c0_44 = arith.constant 0 : index
    %c0_45 = arith.constant 0 : index
    %90 = vector.load %arg15[%c0_44, %c0_45] : memref<1x32xf32, #tpu.memory_space<vmem>>, vector<1x32xf32>
    %c0_46 = arith.constant 0 : index
    %c0_47 = arith.constant 0 : index
    %91 = vector.load %arg16[%c0_46, %c0_47] : memref<1x32xf32, #tpu.memory_space<vmem>>, vector<1x32xf32>
    %cst_48 = arith.constant dense<0.000000e+00> : vector<16xf32>
    %92 = vector.multi_reduction <add>, %89, %cst_48 [1] : vector<16x32xf32> to vector<16xf32>
    %93 = vector.shape_cast %92 : vector<16xf32> to vector<16x1xf32>
    %cst_49 = arith.constant 3.200000e+01 : f32
    %94 = vector.broadcast %cst_49 : f32 to vector<16x1xf32>
    %95 = arith.divf %93, %94 : vector<16x1xf32>
    %96 = vector.broadcast %95 : vector<16x1xf32> to vector<16x32xf32>
    %97 = arith.subf %89, %96 : vector<16x32xf32>
    %98 = arith.mulf %97, %97 : vector<16x32xf32>
    %cst_50 = arith.constant dense<0.000000e+00> : vector<16xf32>
    %99 = vector.multi_reduction <add>, %98, %cst_50 [1] : vector<16x32xf32> to vector<16xf32>
    %100 = vector.shape_cast %99 : vector<16xf32> to vector<16x1xf32>
    %cst_51 = arith.constant 3.200000e+01 : f32
    %101 = vector.broadcast %cst_51 : f32 to vector<16x1xf32>
    %102 = arith.divf %100, %101 : vector<16x1xf32>
    %103 = vector.broadcast %95 : vector<16x1xf32> to vector<16x32xf32>
    %104 = arith.subf %89, %103 : vector<16x32xf32>
    %cst_52 = arith.constant 9.99999974E-6 : f32
    %105 = vector.broadcast %cst_52 : f32 to vector<16x1xf32>
    %106 = arith.addf %102, %105 : vector<16x1xf32>
    %107 = math.rsqrt %106 : vector<16x1xf32>
    %108 = vector.broadcast %107 : vector<16x1xf32> to vector<16x32xf32>
    %109 = arith.mulf %104, %108 : vector<16x32xf32>
    %110 = vector.broadcast %90 : vector<1x32xf32> to vector<16x32xf32>
    %111 = arith.mulf %109, %110 : vector<16x32xf32>
    %112 = vector.broadcast %91 : vector<1x32xf32> to vector<16x32xf32>
    %113 = arith.addf %111, %112 : vector<16x32xf32>
    %c0_53 = arith.constant 0 : index
    %c0_54 = arith.constant 0 : index
    %114 = vector.load %arg17[%c0_53, %c0_54] : memref<16x32xf32, #tpu.memory_space<vmem>>, vector<16x32xf32>
    tpu.vector_store %arg17[%c0_53, %c0_54], %113 {strides = array<i32>} : memref<16x32xf32, #tpu.memory_space<vmem>>, vector<16x32xf32>,
    return
  }
}

</mosaic_0001>

<bundles_post_ra>
// kernel: tpu_custom_call.1
= control target key start
LH: loop header
LB: loop body
LE: loop exit
PB: predicated region body
PF: predicated region fallthrough
CT: control target
= control target key end

     0   :  { %s5907_s0 = inlined_call_operand.vmem [shape: f32[16,32], index: 0, kind: input, shape index: {}]   ;;  %s5908_s1 = inlined_call_operand.vmem [shape: bf16[32,32], index: 1, kind: input, shape index: {}]   ;;  %s5909_s2 = inlined_call_operand.vmem [shape: f32[1,32], index: 2, kind: input, shape index: {}]   ;;  %s5910_s3 = inlined_call_operand.vmem [shape: bf16[32,32], index: 3, kind: input, shape index: {}]   ;;  %s5911_s4 = inlined_call_operand.vmem [shape: f32[1,32], index: 4, kind: input, shape index: {}]   ;;  %s5912_s5 = inlined_call_operand.hbm [shape: bf16[32,32], index: 5, kind: input, shape index: {}]   ;;  %s5913_s6 = inlined_call_operand.hbm [shape: f32[1,32], index: 6, kind: input, shape index: {}]   ;;  %s5914_s7 = inlined_call_operand.hbm [shape: bf16[32,32], index: 7, kind: input, shape index: {}]   ;;  %s5915_s8 = inlined_call_operand.hbm [shape: f32[1,32], index: 8, kind: input, shape index: {}]   ;;  %s5916_s9 = inlined_call_operand.hbm [shape: f32[1,32], index: 9, kind: input, shape index: {}]   ;;  %s5917_s10 = inlined_call_operand.vmem [shape: f32[1,32], index: 10, kind: input, shape index: {}]   ;;  %s5918_s11 = inlined_call_operand.vmem [shape: bf16[32,64], index: 11, kind: input, shape index: {}]   ;;  %s5919_s12 = inlined_call_operand.vmem [shape: f32[1,64], index: 12, kind: input, shape index: {}]   ;;  %s5920_s13 = inlined_call_operand.vmem [shape: bf16[64,32], index: 13, kind: input, shape index: {}]   ;;  %s5921_s14 = inlined_call_operand.vmem [shape: f32[1,32], index: 14, kind: input, shape index: {}]   ;;  %s5922_s15 = inlined_call_operand.vmem [shape: f32[1,32], index: 15, kind: input, shape index: {}]   ;;  %s5923_s16 = inlined_call_operand.vmem [shape: f32[1,32], index: 16, kind: input, shape index: {}]   ;;  %s5924_s17 = inlined_call_operand.hbm [shape: f32[16,32], index: 17, kind: output, shape index: {}]  }
   0x1   :  { %5927 = sst [smem:[#allocation16_spill]] %s5907_s0 }
   0x2   :  { %5928 = sst [smem:[#allocation17_spill]] %s5908_s1 }
   0x3   :  { %22 = vsyncpa [#allocation3], 0 }
   0x4   :  { %23 = vsyncpa [#allocation6], 0 }
   0x5   :  { %24 = vsyncpa [#allocation9], 0 }
   0x6   :  { %25 = vsyncpa [#allocation4], 0  ;;  %s4754_s24 = smov [#allocation5]   ;;  %s4755_s26 = smov [#allocation8]  }
   0x7   :  { %s54_s25 = sshll.u32 %s4754_s24, 4  ;;  %s76_s27 = sshll.u32 %s4755_s26, 4  ;;  %s55_s25 = int_to_ptr.vmem [resolvable:$true] %s54_s25  ;;  %s77_s27 = int_to_ptr.vmem [resolvable:$true] %s76_s27 }
   0x8   :  { %s4614_s0 = scalar_lea.hbm %s5913_s6, 16 }
   0x9   :  { %p4615_p0 = scmp.ne.s32.totalorder %s5913_s6, %s4614_s0  ;;  %p4618_p1 = scmp.lt.u32.totalorder %s4614_s0, %s5913_s6 }
   0xb   :  { %p4620_p2 = pnand %p4618_p1, %p4615_p0 }
   0xd   :  { %4623 = shalt.err (!%p4620_p2)
}
   0xe   :  { %s4624_s20 = scalar_lea.vmem %s55_s25, 16  ;;  %s4628_s21 = scalar_lea.vmem %s55_s25, 32 }
   0xf   :  { %p4625_p3 = scmp.ne.s32.totalorder %s55_s25, %s4624_s20  ;;  %p4629_p4 = scmp.lt.s32.totalorder %s55_s25, %s55_s25 }
  0x10   :  { %p4630_p5 = scmp.lt.s32.totalorder %s4628_s21, %s4624_s20 }
  0x12   :  { %p4631_p6 = por %p4630_p5, %p4629_p4 }
  0x14   :  { %p4632_p7 = pnand %p4631_p6, %p4625_p3 }
  0x16   :  { %4635 = shalt.err (!%p4632_p7)
}
  0x17   :  { %57 = dma.hbm_to_vmem [thread:$0]  %s5913_s6, 16, %s55_s25, [#allocation6]  }
  0x18   :  { %s4636_s28 = scalar_lea.hbm %s5915_s8, 16 }
  0x19   :  { %p4637_p8 = scmp.ne.s32.totalorder %s5915_s8, %s4636_s28  ;;  %p4640_p9 = scmp.lt.u32.totalorder %s4636_s28, %s5915_s8 }
  0x1b   :  { %p4642_p10 = pnand %p4640_p9, %p4637_p8 }
  0x1d   :  { %4645 = shalt.err (!%p4642_p10)
}
  0x1e   :  { %s4646_s19 = scalar_lea.vmem %s77_s27, 16  ;;  %s4650_s1 = scalar_lea.vmem %s77_s27, 32 }
  0x1f   :  { %p4647_p11 = scmp.ne.s32.totalorder %s77_s27, %s4646_s19  ;;  %p4651_p12 = scmp.lt.s32.totalorder %s77_s27, %s77_s27 }
  0x20   :  { %p4652_p13 = scmp.lt.s32.totalorder %s4650_s1, %s4646_s19 }
  0x22   :  { %p4653_p0 = por %p4652_p13, %p4651_p12 }
  0x24   :  { %p4654_p1 = pnand %p4653_p0, %p4647_p11 }
  0x26   :  { %4657 = shalt.err (!%p4654_p1)
}
  0x27   :  { %79 = dma.hbm_to_vmem [thread:$0]  %s5915_s8, 16, %s77_s27, [#allocation9]  }
  0x28   :  { %s4756_s20 = smov [#allocation2]   ;;  %s4658_s24 = scalar_lea.hbm %s5912_s5, 256 }
  0x29   :  { %s41_s21 = sshll.u32 %s4756_s20, 4  ;;  %p4659_p2 = scmp.ne.s32.totalorder %s5912_s5, %s4658_s24  ;;  %s42_s21 = int_to_ptr.vmem [resolvable:$true] %s41_s21 }
  0x2a   :  { %p4662_p3 = scmp.lt.u32.totalorder %s4658_s24, %s5912_s5 }
  0x2c   :  { %p4664_p4 = pnand %p4662_p3, %p4659_p2 }
  0x2e   :  { %4667 = shalt.err (!%p4664_p4)
}
  0x2f   :  { %s4668_s30 = scalar_lea.vmem %s42_s21, 256  ;;  %p4673_p6 = scmp.lt.s32.totalorder %s42_s21, %s42_s21 }
  0x30   :  { %p4669_p5 = scmp.ne.s32.totalorder %s42_s21, %s4668_s30  ;;  %p4674_p7 = scmp.lt.s32.totalorder %s4668_s30, %s4668_s30 }
  0x32   :  { %p4675_p8 = por %p4674_p7, %p4673_p6 }
  0x34   :  { %p4676_p9 = pnand %p4675_p8, %p4669_p5 }
  0x36   :  { %4679 = shalt.err (!%p4676_p9)
}
  0x37   :  { %s4757_s8 = smov 64   ;;  %s4758_s27 = smov 4  }
  0x38   :  { %47 = dma.hbm_to_vmem [thread:$0]  %s5912_s5, 256, %s42_s21, [#allocation3], %s4757_s8, %s4757_s8, %s4758_s27  }
  0x39   :  { %s4759_s1 = smov [#allocation7]   ;;  %s4760_s25 = smov [#allocation10]  }
  0x3a   :  { %s63_s6 = sshll.u32 %s4759_s1, 4  ;;  %s86_s20 = sshll.u32 %s4760_s25, 4  ;;  %s64_s6 = int_to_ptr.vmem [resolvable:$true] %s63_s6  ;;  %s87_s20 = int_to_ptr.vmem [resolvable:$true] %s86_s20 }
  0x3b   :  { %s4680_s24 = scalar_lea.hbm %s5914_s7, 256 }
  0x3c   :  { %p4681_p10 = scmp.ne.s32.totalorder %s5914_s7, %s4680_s24  ;;  %p4684_p11 = scmp.lt.u32.totalorder %s4680_s24, %s5914_s7 }
  0x3e   :  { %p4686_p12 = pnand %p4684_p11, %p4681_p10 }
  0x40   :  { %4689 = shalt.err (!%p4686_p12)
}
  0x41   :  { %s4690_s5 = scalar_lea.vmem %s64_s6, 256  ;;  %p4695_p0 = scmp.lt.s32.totalorder %s64_s6, %s64_s6 }
  0x42   :  { %p4691_p13 = scmp.ne.s32.totalorder %s64_s6, %s4690_s5  ;;  %p4696_p1 = scmp.lt.s32.totalorder %s4690_s5, %s4690_s5 }
  0x44   :  { %p4697_p2 = por %p4696_p1, %p4695_p0 }
  0x46   :  { %p4698_p3 = pnand %p4697_p2, %p4691_p13 }
  0x48   :  { %4701 = shalt.err (!%p4698_p3)
}
  0x49   :  { %69 = dma.hbm_to_vmem [thread:$0]  %s5914_s7, 256, %s64_s6, [#allocation6], %s4757_s8, %s4757_s8, %s4758_s27  }
  0x4a   :  { %s4702_s1 = scalar_lea.hbm %s5916_s9, 16 }
  0x4b   :  { %p4703_p4 = scmp.ne.s32.totalorder %s5916_s9, %s4702_s1  ;;  %p4706_p5 = scmp.lt.u32.totalorder %s4702_s1, %s5916_s9 }
  0x4d   :  { %p4708_p6 = pnand %p4706_p5, %p4703_p4 }
  0x4f   :  { %4711 = shalt.err (!%p4708_p6)
}
  0x50   :  { %s4712_s26 = scalar_lea.vmem %s87_s20, 16  ;;  %s4716_s28 = scalar_lea.vmem %s87_s20, 32 }
  0x51   :  { %p4713_p7 = scmp.ne.s32.totalorder %s87_s20, %s4712_s26  ;;  %p4717_p8 = scmp.lt.s32.totalorder %s87_s20, %s87_s20 }
  0x52   :  { %p4718_p9 = scmp.lt.s32.totalorder %s4716_s28, %s4712_s26 }
  0x54   :  { %p4719_p10 = por %p4718_p9, %p4717_p8 }
  0x56   :  { %p4720_p11 = pnand %p4719_p10, %p4713_p7 }
  0x58   :  { %4723 = shalt.err (!%p4720_p11)
}
  0x59   :  { %89 = dma.hbm_to_vmem [thread:$0]  %s5916_s9, 16, %s87_s20, [#allocation9]  }
  0x5a   :  { %4746 = dma.done.wait [#allocation3], 256  }
  0x5b   :  { %4747 = vsyncadd [#allocation3], 4294967040 }
  0x5c   :  { %4748 = dma.done.wait [#allocation6], 272  }
  0x5d   :  { %4749 = vsyncadd [#allocation6], 4294967024 }
  0x5e   :  { %4750 = dma.done.wait [#allocation9], 32  }
  0x5f   :  { %4751 = vsyncadd [#allocation9], 4294967264  ;;  %v4761_v0 = vmov 0.0   ;;  %vm4762_vm0 = vmmov 0   ;;  %v4526_v1 = vld [vmem:[%s5910_s3] sm:$0xff]   ;;  %v4527_v2 = vld [vmem:[%s5910_s3 + $0x8] sm:$0xff]   ;;  %v372_v40 = vlaneseq }
  0x60   :  { %4228 = vmatprep.subr.bf16.mxu1 %v4761_v0  ;;  %4232 = vmatprep.mubr.msk.bf16.mxu1 %vm4762_vm0, %v4761_v0  ;;  %s5929_s21 = sld [smem:[#allocation16_spill]]  ;;  %s5930_s25 = sld [smem:[#allocation17_spill]]  ;;  %vm146_vm1 = vcmask 261120   ;;  %v4530_v8 = vld [vmem:[#allocation2] sm:$0xff]   ;;  %v4531_v9 = vld [vmem:[#allocation2 + $0x8] sm:$0xff]   ;;  %vm1423_vm2 = vcmask 31744  }
  0x61   :  { %4220 = vmatprep.subr.bf16.mxu0 %v4761_v0  ;;  %4224 = vmatprep.mubr.msk.bf16.mxu0 %vm4762_vm0, %v4761_v0  ;;  %v4050_v10 = vld [vmem:[%s5911_s4] ss:$0 sm:$0xff]  ;;  %s4763_s7 = smov 116   ;;  %s4764_s4 = smov 124   ;;  %v4054_v26 = vld [vmem:[#allocation5] ss:$0 sm:$0xff] }
  0x62   :  { %4229 = vmatpush3.bf16.msra.mxu1 %v4526_v1  ;;  %v4046_v13 = vld [vmem:[%s5909_s2] ss:$0 sm:$0xff]  ;;  %s4765_s2 = smov 112   ;;  %s4766_s8 = smov 120   ;;  %v4770_v38 = vmov 1983009808  }
  0x63   :  { %4230 = vmatprep.subr.bf16.mxu1 %v4761_v0  ;;  %s4767_s6 = smov 104   ;;  %s4768_s9 = smov 108   ;;  %v370_v39 = vunpack.c.l.s4 %v4770_v38  ;;  %v373_v43 = vshrl.u32 %v372_v40, 7  ;;  %v4771_v49 = vmov 1934713408   ;;  %vm2160_vm3 = vcmask 64512  }
  0x64   :  { %s4769_s20 = smov 100   ;;  %v402_v50 = vunpack.c.l.s4 %v4771_v49  ;;  %vm2356_vm4 = vcmask 1043456   ;;  %s4773_s29 = smov 8   ;;  %vm3694_vm5 = vcmask 97280   ;;  %vm3697_vm6 = vcmask 130048  }
  0x65   :  { %v371_v42 = vunpack.c.0.s8 %v370_v39  ;;  %s4774_s0 = smov 12   ;;  %s4776_s5 = smov 16   ;;  %vm3700_vm7 = vcmask 162816   ;;  %vm3703_vm8 = vcmask 195584   ;;  %vm3706_vm9 = vcmask 228352  }
  0x66   :  { %v120_v3 = vld [vmem:[%s5929_s21] sm:$0xff]  ;;  %v121_v4 = vld [vmem:[%s5929_s21 + $0x8] sm:$0xff]  ;;  %4231 = vmatpush3.bf16.msra.mxu1 %v4527_v2  ;;  %v403_v2 = vunpack.c.0.s8 %v402_v50  ;;  %s4777_s30 = smov 28   ;;  %s4778_s18 = smov 24   ;;  %vm3934_vm10 = vcmask 523264  }
  0x67   :  { %v4528_v5 = vld [vmem:[%s5930_s25] sm:$0xff]   ;;  %v4529_v6 = vld [vmem:[%s5930_s25 + $0x8] sm:$0xff]   ;;  %v122_v7 = vpack.c.bf16 %v121_v4, %v120_v3  ;;  %4244 = vmatprep.subr.bf16.mxu1 %v4761_v0  ;;  %v5017_v53 = vsub.s32 %v371_v42, %v373_v43 }
  0x68   :  { %4221 = vmatpush3.bf16.msra.mxu0 %v4528_v5 }
  0x69   :  { %4222 = vmatprep.subr.bf16.mxu0 %v4761_v0  ;;  %4233 = vmatmul.mubr.msk.bf16.vlgmr.msra.gmra.mrb[0].mxu1 %vm146_vm1, %v122_v7 }
  0x6a   :  { %4246 = vmatprep.mubr.msk.bf16.mxu1 %vm4762_vm0, %v4761_v0 }
  0x6c   :  { %4223 = vmatpush3.bf16.msra.mxu0 %v4529_v6 }
  0x6d   :  { %4236 = vmatprep.subr.bf16.mxu0 %v4761_v0 }
  0x6f   :  { %4225 = vmatmul.mubr.msk.bf16.vlgmr.msra.gmra.mrb[0].mxu0 %vm146_vm1, %v122_v7 }
  0x70   :  { %4240 = vmatprep.mubr.msk.bf16.mxu0 %vm4762_vm0, %v4761_v0  ;;  %4237 = vmatpush3.bf16.msra.mxu0 %v4530_v8 }
  0x71   :  { %4238 = vmatprep.subr.bf16.mxu0 %v4761_v0 }
  0x74   :  { %4239 = vmatpush3.bf16.msra.mxu0 %v4531_v9 }
  0x75   :  { %4250 = vmatprep.subr.bf16.mxu0 %v4761_v0 }
  0x77   :  { %4241 = vmatmul.mubr.msk.bf16.vlgmr.msra.gmra.mrb[4].mxu0 %vm146_vm1, %v122_v7 }
  0x78   :  { %4252 = vmatprep.mubr.msk.bf16.mxu0 %vm4762_vm0, %v4761_v0 }
 0x13c   :  { %v248_v11 = vpop.f32.mrb[0].mxu1 }
 0x13d   :  { %v4234_v12 = vpop.f32.mrb[1].mxu1  ;;  %v249_v15 = vadd.f32 %v4050_v10, %v248_v11 }
 0x13e   :  { %v251_v14 = vpop.f32.mrb[2].mxu1  ;;  %v5042_v12 = vsub.s32 %v403_v2, %v373_v43 }
 0x13f   :  { %v252_v16 = vadd.f32 %v4050_v10, %v251_v14  ;;  %v4235_v17 = vpop.f32.mrb[3].mxu1 }
 0x141   :  { %v4978_v21 = vpack.c.bf16 %v252_v16, %v249_v15 }
 0x142   :  { %v184_v18 = vpop.f32.mrb[0].mxu0 }
 0x143   :  { %v185_v19 = vadd.f32 %v4046_v13, %v184_v18  ;;  %v4226_v20 = vpop.f32.mrb[1].mxu0  ;;  %693 = vrot.lane.b32.xlu1 %v4978_v21, %s4763_s7  ;;  %689 = vrot.lane.b32.xlu0 %v4978_v21, %s4764_s4  ;;  %v707_v57 = vshrl.u32 %v4978_v21, 16 }
 0x144   :  { %v187_v22 = vpop.f32.mrb[2].mxu0 }
 0x145   :  { %v188_v23 = vadd.f32 %v4046_v13, %v187_v22  ;;  %v4227_v24 = vpop.f32.mrb[3].mxu0 }
 0x147   :  { %v4983_v25 = vpack.c.bf16 %v188_v23, %v185_v19  ;;  %695 = vrot.lane.b32.xlu1 %v4978_v21, %s4765_s2  ;;  %691 = vrot.lane.b32.xlu0 %v4978_v21, %s4766_s8 }
 0x149   :  { %v339_v39 = vshrl.u32 %v4983_v25, 16 }
 0x14a   :  { %v312_v27 = vpop.f32.mrb[4].mxu0 }
 0x14b   :  { %699 = vrot.lane.b32.xlu1 %v4978_v21, %s4767_s6  ;;  %697 = vrot.lane.b32.xlu0 %v4978_v21, %s4768_s9  ;;  %v313_v28 = vadd.f32 %v4054_v26, %v312_v27  ;;  %v4242_v29 = vpop.f32.mrb[5].mxu0 }
 0x14c   :  { %v315_v30 = vpop.f32.mrb[6].mxu0 }
 0x14d   :  { %v316_v31 = vadd.f32 %v4054_v26, %v315_v30  ;;  %v4243_v32 = vpop.f32.mrb[7].mxu0 }
 0x14f   :  { %701 = vrot.lane.b32.xlu0 %v4978_v21, %s4769_s20  ;;  %321 = vrot.lane.b32.xlu1 %v4983_v25, %s4764_s4  ;;  %v5006_v33 = vpack.c.bf16 %v316_v31, %v313_v28 }
 0x153   :  { %323 = vrot.lane.b32.xlu0 %v4983_v25, %s4766_s8  ;;  %325 = vrot.lane.b32.xlu1 %v4983_v25, %s4763_s7 }
 0x157   :  { %327 = vrot.lane.b32.xlu0 %v4983_v25, %s4765_s2  ;;  %329 = vrot.lane.b32.xlu1 %v4983_v25, %s4768_s9 }
 0x15b   :  { %331 = vrot.lane.b32.xlu0 %v4983_v25, %s4767_s6  ;;  %333 = vrot.lane.b32.xlu1 %v4983_v25, %s4769_s20 }
 0x15f   :  { %1057 = vrot.lane.b32.xlu1 %v5006_v33, %s4764_s4  ;;  %1059 = vrot.lane.b32.xlu0 %v5006_v33, %s4766_s8 }
 0x163   :  { %1061 = vrot.lane.b32.xlu1 %v5006_v33, %s4763_s7 }
 0x1b5   :  { %v694_v34 = vpop.permute.xlu1 %693  ;;  %v690_v35 = vpop.permute.xlu0 %689 }
 0x1b6   :  { %v708_v47 = vshrl.u32 %v690_v35, 16  ;;  %v5015_v51 = vpack.i.b16 %v690_v35, %v4978_v21  ;;  %v716_v56 = vshrl.u32 %v694_v34, 16 }
 0x1b8   :  { %v5028_v1 = vpack.i.b16 %v708_v47, %v707_v57 }
 0x1b9   :  { %v696_v36 = vpop.permute.xlu1 %695  ;;  %v692_v37 = vpop.permute.xlu0 %691 }
 0x1ba   :  { %v723_v48 = vshrl.u32 %v696_v36, 16  ;;  %v715_v52 = vshrl.u32 %v692_v37, 16  ;;  %v5020_v58 = vpack.i.b16 %v694_v34, %v692_v37 }
 0x1bc   :  { %v5030_v3 = vpack.i.b16 %v716_v56, %v715_v52 }
 0x1bd   :  { %v700_v41 = vpop.permute.xlu1 %699  ;;  %v698_v44 = vpop.permute.xlu0 %697 }
 0x1be   :  { %v724_v45 = vshrl.u32 %v698_v44, 16  ;;  %v5012_v46 = vpack.i.b16 %v698_v44, %v696_v36  ;;  %v731_v60 = vshrl.u32 %v700_v41, 16 }
 0x1c0   :  { %v5022_v59 = vpack.i.b16 %v724_v45, %v723_v48  ;;  %v735_v61 = vcombine.low %v5015_v51, %v5012_v46 }
 0x1c1   :  { %v702_v54 = vpop.permute.xlu0 %701  ;;  %v322_v55 = vpop.permute.xlu1 %321 }
 0x1c2   :  { %v5026_v62 = vpack.i.b16 %v702_v54, %v700_v41  ;;  %v732_v63 = vshrl.u32 %v702_v54, 16  ;;  %v803_v8 = vcombine.low %v5028_v1, %v5022_v59  ;;  %v743_v9 = vrot.slane %v735_v61, %v5017_v53 }
 0x1c3   :  { %v5051_v26 = vpack.i.b16 %v322_v55, %v4983_v25  ;;  %v340_v29 = vshrl.u32 %v322_v55, 16 }
 0x1c4   :  { %v5032_v4 = vpack.i.b16 %v732_v63, %v731_v60  ;;  %v751_v5 = vcombine.low %v5020_v58, %v5026_v62  ;;  %v811_v17 = vrot.slane %v803_v8, %v5017_v53  ;;  %v752_v57 = vcombine.high %v5020_v58, %v5026_v62 }
 0x1c5   :  { %v324_v6 = vpop.permute.xlu0 %323  ;;  %v326_v7 = vpop.permute.xlu1 %325  ;;  %v5065_v48 = vpack.i.b16 %v340_v29, %v339_v39 }
 0x1c6   :  { %v759_v10 = vrot.slane %v751_v5, %v5017_v53  ;;  %v819_v11 = vcombine.low %v5030_v3, %v5032_v4  ;;  %v347_v30 = vshrl.u32 %v324_v6, 16  ;;  %v348_v31 = vshrl.u32 %v326_v7, 16 }
 0x1c7   :  { %v5056_v40 = vpack.i.b16 %v326_v7, %v324_v6  ;;  %v736_v6 = vcombine.high %v5015_v51, %v5012_v46  ;;  %v766_v62 = vrot.slane %v752_v57, %v5017_v53  ;;  %v820_v46 = vcombine.high %v5030_v3, %v5032_v4 }
 0x1c8   :  { %v767_v13 = vcombine.low %v743_v9, %v759_v10  ;;  %v768_v14 = vcombine.high %v743_v9, %v759_v10  ;;  %v827_v18 = vrot.slane %v819_v11, %v5017_v53  ;;  %v5067_v49 = vpack.i.b16 %v348_v31, %v347_v30 }
 0x1c9   :  { %v328_v15 = vpop.permute.xlu0 %327  ;;  %v330_v16 = vpop.permute.xlu1 %329  ;;  %v834_v30 = vrot.slane %v820_v46, %v5017_v53 }
 0x1ca   :  { %v775_v19 = vrot.slane %v767_v13, %v5042_v12  ;;  %v782_v20 = vrot.slane %v768_v14, %v5042_v12  ;;  %v835_v21 = vcombine.low %v811_v17, %v827_v18  ;;  %v836_v22 = vcombine.high %v811_v17, %v827_v18 }
 0x1cb   :  { %v5053_v27 = vpack.i.b16 %v330_v16, %v328_v15  ;;  %v355_v32 = vshrl.u32 %v328_v15, 16  ;;  %v356_v41 = vshrl.u32 %v330_v16, 16  ;;  %v750_v15 = vrot.slane %v736_v6, %v5017_v53 }
 0x1cc   :  { %v843_v23 = vrot.slane %v835_v21, %v5042_v12  ;;  %v850_v24 = vrot.slane %v836_v22, %v5042_v12  ;;  %v871_v35 = vcombine.low %v775_v19, %v782_v20  ;;  %v4062_v36 = vcombine.high %v775_v19, %v782_v20 }
 0x1cd   :  { %v332_v28 = vpop.permute.xlu0 %331  ;;  %v334_v34 = vpop.permute.xlu1 %333  ;;  %v367_v43 = vcombine.low %v5051_v26, %v5053_v27  ;;  %v5069_v50 = vpack.i.b16 %v356_v41, %v355_v32  ;;  %v804_v20 = vcombine.high %v5028_v1, %v5022_v59  ;;  %v783_v21 = vcombine.low %v750_v15, %v766_v62 }
 0x1ce   :  { %v905_v37 = vcombine.low %v843_v23, %v850_v24  ;;  %v4063_v38 = vcombine.high %v843_v23, %v850_v24  ;;  %v363_v42 = vshrl.u32 %v332_v28, 16  ;;  %v5060_v44 = vpack.i.b16 %v334_v34, %v332_v28 }
 0x1cf   :  { %v364_v45 = vshrl.u32 %v334_v34, 16  ;;  %v5075_v52 = vrot.slane %v871_v35, %v5017_v53  ;;  %v5078_v54 = vrot.slane %v4062_v36, %v5017_v53  ;;  %v435_v60 = vcombine.low %v5065_v48, %v5069_v50 }
 0x1d0   :  { %v5063_v47 = vrot.slane %v905_v37, %v5017_v53  ;;  %v5072_v25 = vrot.slane %v4063_v38, %v5017_v53  ;;  %v383_v56 = vcombine.low %v5056_v40, %v5060_v44  ;;  %v375_v61 = vrot.slane %v367_v43, %v5017_v53 }
 0x1d1   :  { %v5080_v55 = vpack.i.b16 %v364_v45, %v363_v42  ;;  %v887_v58 = vcombine.low %v5075_v52, %v5078_v54  ;;  %v443_v9 = vrot.slane %v435_v60, %v5017_v53  ;;  %v784_v29 = vcombine.high %v750_v15, %v766_v62 }
 0x1d2   :  { %v391_v63 = vrot.slane %v383_v56, %v5017_v53  ;;  %v921_v5 = vcombine.low %v5063_v47, %v5072_v25  ;;  %v818_v34 = vrot.slane %v804_v20, %v5017_v53  ;;  %v5129_v37 = vrot.slane %v783_v21, %v5042_v12 }
 0x1d3   :  { %v451_v2 = vcombine.low %v5067_v49, %v5080_v55  ;;  %v895_v19 = vrot.slane %v887_v58, %v5042_v12  ;;  %v4772_v41 = vmov 0   ;;  %v5134_v43 = vrot.slane %v784_v29, %v5042_v12 }
 0x1d4   :  { %v399_v7 = vcombine.low %v375_v61, %v391_v63  ;;  %v400_v8 = vcombine.high %v375_v61, %v391_v63  ;;  %v929_v14 = vrot.slane %v921_v5, %v5042_v12  ;;  %v851_v45 = vcombine.low %v818_v34, %v834_v30 }
 0x1d5   :  { %v459_v10 = vrot.slane %v451_v2, %v5017_v53  ;;  %v1010_v1 = vshrl.u32 %v895_v19, 16  ;;  %v903_v42 = vcombine.high %v895_v19, %v4772_v41  ;;  %v852_v60 = vcombine.high %v818_v34, %v834_v30 }
 0x1d6   :  { %v407_v11 = vrot.slane %v399_v7, %v5042_v12  ;;  %v414_v13 = vrot.slane %v400_v8, %v5042_v12  ;;  %v1009_v4 = vpack.i.b16 %v929_v14, %v895_v19  ;;  %v1011_v28 = vshrl.u32 %v929_v14, 16 }
 0x1d7   :  { %v467_v51 = vcombine.low %v443_v9, %v459_v10  ;;  %v468_v16 = vcombine.high %v443_v9, %v459_v10  ;;  %v368_v61 = vcombine.high %v5051_v26, %v5053_v27  ;;  %v937_v2 = vcombine.high %v929_v14, %v4772_v41 }
 0x1d8   :  { %v503_v17 = vcombine.low %v407_v11, %v414_v13  ;;  %v4058_v18 = vcombine.high %v407_v11, %v414_v13  ;;  %v1428_v38 = vsel %vm1423_vm2, %v1009_v4, 0  ;;  %v1012_v39 = vpack.i.b16 %v1011_v28, %v1010_v1 }
 0x1d9   :  { %v475_v22 = vrot.slane %v467_v51, %v5042_v12  ;;  %v482_v23 = vrot.slane %v468_v16, %v5042_v12  ;;  %4245 = vmatpush3.bf16.xpose.msra.mxu1 %v1428_v38  ;;  %v384_v5 = vcombine.high %v5056_v40, %v5060_v44  ;;  %v452_v6 = vcombine.high %v5067_v49, %v5080_v55 }
 0x1da   :  { %v5113_v24 = vrot.slane %v503_v17, %v5017_v53  ;;  %v5116_v3 = vrot.slane %v4058_v18, %v5017_v53  ;;  %v1474_v63 = vsel %vm1423_vm2, %v1012_v39, 0  ;;  %4256 = vmatprep.subr.bf16.mxu1 %v4761_v0  ;;  %v922_v8 = vcombine.high %v5063_v47, %v5072_v25 }
 0x1db   :  { %v537_v31 = vcombine.low %v475_v22, %v482_v23  ;;  %v4059_v32 = vcombine.high %v475_v22, %v482_v23  ;;  %4251 = vmatpush3.bf16.xpose.msra.mxu0 %v1474_v63  ;;  %v1015_v58 = vpack.i.b16 %v937_v2, %v903_v42  ;;  %v1016_v26 = vshrl.u32 %v903_v42, 16 }
 0x1dc   :  { %v519_v59 = vcombine.low %v5113_v24, %v5116_v3  ;;  %4262 = vmatprep.subr.bf16.mxu0 %v4761_v0  ;;  %v1017_v27 = vshrl.u32 %v937_v2, 16  ;;  %v888_v62 = vcombine.high %v5075_v52, %v5078_v54  ;;  %v436_v40 = vcombine.high %v5065_v48, %v5069_v50 }
 0x1dd   :  { %v5123_v35 = vrot.slane %v537_v31, %v5017_v53  ;;  %v5126_v36 = vrot.slane %v4059_v32, %v5017_v53  ;;  %v859_v55 = vrot.slane %v851_v45, %v5042_v12  ;;  %v866_v10 = vrot.slane %v852_v60, %v5042_v12 }
 0x1de   :  { %v527_v57 = vrot.slane %v519_v59, %v5042_v12  ;;  %v1018_v11 = vpack.i.b16 %v1017_v27, %v1016_v26  ;;  %v936_v47 = vrot.slane %v922_v8, %v5042_v12  ;;  %v939_v25 = vcombine.low %v5129_v37, %v5134_v43 }
 0x1df   :  { %v553_v56 = vcombine.low %v5123_v35, %v5126_v36  ;;  %v398_v13 = vrot.slane %v384_v5, %v5017_v53  ;;  %v466_v52 = vrot.slane %v452_v6, %v5017_v53  ;;  %v4064_v48 = vcombine.high %v5129_v37, %v5134_v43 }
 0x1e0   :  { %v642_v9 = vshrl.u32 %v527_v57, 16  ;;  %v1520_v50 = vsel %vm1423_vm2, %v1015_v58, 0  ;;  %v902_v15 = vrot.slane %v888_v62, %v5042_v12  ;;  %v382_v46 = vrot.slane %v368_v61, %v5017_v53 }
 0x1e1   :  { %v561_v7 = vrot.slane %v553_v56, %v5042_v12  ;;  %v450_v51 = vrot.slane %v436_v40, %v5017_v53  ;;  %v535_v16 = vcombine.high %v527_v57, %v4772_v41  ;;  %v973_v17 = vcombine.low %v859_v55, %v866_v10 }
 0x1e2   :  { %v4065_v18 = vcombine.high %v859_v55, %v866_v10  ;;  %v1566_v19 = vsel %vm1423_vm2, %v1018_v11, 0  ;;  %v1023_v20 = vshrl.u32 %v936_v47, 16  ;;  %v415_v21 = vcombine.low %v382_v46, %v398_v13 }
 0x1e3   :  { %v641_v44 = vpack.i.b16 %v561_v7, %v527_v57  ;;  %v643_v49 = vshrl.u32 %v561_v7, 16  ;;  %v569_v14 = vcombine.high %v561_v7, %v4772_v41  ;;  %v483_v22 = vcombine.low %v450_v51, %v466_v52 }
 0x1e4   :  { %v484_v23 = vcombine.high %v450_v51, %v466_v52  ;;  %v554_v4 = vcombine.high %v5123_v35, %v5126_v36  ;;  %v1021_v28 = vpack.i.b16 %v936_v47, %v902_v15  ;;  %v1022_v30 = vshrl.u32 %v902_v15, 16 }
 0x1e5   :  { %v644_v54 = vpack.i.b16 %v643_v49, %v642_v9  ;;  %4247 = vmatmul.mubr.msk.bf16.vlgmr.msra.gmra.mrb[4].mxu1 %vm1423_vm2, %v641_v44  ;;  %v649_v29 = vshrl.u32 %v569_v14, 16  ;;  %v416_v31 = vcombine.high %v382_v46, %v398_v13  ;;  %v520_v32 = vcombine.high %v5113_v24, %v5116_v3 }
 0x1e6   :  { %4257 = vmatpush3.bf16.xpose.msra.mxu1 %v1520_v50  ;;  %4258 = vmatprep.mubr.msk.bf16.mxu1 %vm4762_vm0, %v4761_v0  ;;  %v647_v59 = vpack.i.b16 %v569_v14, %v535_v16  ;;  %v648_v1 = vshrl.u32 %v535_v16, 16  ;;  %v1024_v34 = vpack.i.b16 %v1023_v20, %v1022_v30  ;;  %v938_v37 = vcombine.high %v936_v47, %v4772_v41 }
 0x1e7   :  { %4253 = vmatmul.mubr.msk.bf16.vlgmr.msra.gmra.mrb[8].mxu0 %vm1423_vm2, %v644_v54  ;;  %4268 = vmatprep.subr.bf16.mxu1 %v4761_v0  ;;  %v5186_v38 = vrot.slane %v973_v17, %v5017_v53  ;;  %v5189_v39 = vrot.slane %v4065_v18, %v5017_v53  ;;  %v5192_v35 = vrot.slane %v939_v25, %v5017_v53  ;;  %v1612_v3 = vsel %vm1423_vm2, %v1021_v28, 0 }
 0x1e8   :  { %4263 = vmatpush3.bf16.xpose.msra.mxu0 %v1566_v19  ;;  %4264 = vmatprep.mubr.msk.bf16.mxu0 %vm4762_vm0, %v4761_v0  ;;  %v5195_v36 = vrot.slane %v4064_v48, %v5017_v53  ;;  %v491_v42 = vrot.slane %v483_v22, %v5042_v12  ;;  %v498_v24 = vrot.slane %v484_v23, %v5042_v12  ;;  %v1658_v61 = vsel %vm1423_vm2, %v1024_v34, 0 }
 0x1e9   :  { %4274 = vmatprep.subr.bf16.mxu0 %v4761_v0  ;;  %v650_v43 = vpack.i.b16 %v649_v29, %v648_v1  ;;  %v568_v45 = vrot.slane %v554_v4, %v5042_v12  ;;  %v904_v56 = vcombine.high %v902_v15, %v4772_v41  ;;  %v423_v57 = vrot.slane %v415_v21, %v5042_v12 }
 0x1ea   :  { %v430_v60 = vrot.slane %v416_v31, %v5042_v12  ;;  %v534_v63 = vrot.slane %v520_v32, %v5042_v12  ;;  %v1029_v2 = vshrl.u32 %v938_v37, 16  ;;  %v989_v5 = vcombine.low %v5186_v38, %v5189_v39 }
 0x1eb   :  { %v605_v6 = vcombine.low %v491_v42, %v498_v24  ;;  %v4061_v7 = vcombine.high %v491_v42, %v498_v24  ;;  %v1027_v8 = vpack.i.b16 %v938_v37, %v904_v56  ;;  %v655_v58 = vshrl.u32 %v568_v45, 16 }
 0x1ec   :  { %v1028_v26 = vshrl.u32 %v904_v56, 16  ;;  %v955_v27 = vcombine.low %v5192_v35, %v5195_v36  ;;  %v571_v62 = vcombine.low %v423_v57, %v430_v60  ;;  %v4060_v40 = vcombine.high %v423_v57, %v430_v60 }
 0x1ed   :  { %4259 = vmatmul.mubr.msk.bf16.vlgmr.msra.gmra.mrb[8].mxu1 %vm1423_vm2, %v647_v59  ;;  %v653_v44 = vpack.i.b16 %v568_v45, %v534_v63  ;;  %v654_v9 = vshrl.u32 %v534_v63, 16  ;;  %v997_v55 = vrot.slane %v989_v5, %v5042_v12  ;;  %v5220_v10 = vrot.slane %v605_v6, %v5017_v53 }
 0x1ee   :  { %4269 = vmatpush3.bf16.xpose.msra.mxu1 %v1612_v3  ;;  %4270 = vmatprep.mubr.msk.bf16.mxu1 %vm4762_vm0, %v4761_v0  ;;  %v1030_v49 = vpack.i.b16 %v1029_v2, %v1028_v26  ;;  %v5223_v11 = vrot.slane %v4061_v7, %v5017_v53  ;;  %v1704_v47 = vsel %vm1423_vm2, %v1027_v8, 0  ;;  %v570_v13 = vcombine.high %v568_v45, %v4772_v41 }
 0x1ef   :  { %4265 = vmatmul.mubr.msk.bf16.vlgmr.msra.gmra.mrb[12].mxu0 %vm1423_vm2, %v650_v43  ;;  %4280 = vmatprep.subr.bf16.mxu1 %v4761_v0  ;;  %v656_v25 = vpack.i.b16 %v655_v58, %v654_v9  ;;  %v963_v52 = vrot.slane %v955_v27, %v5042_v12  ;;  %v5230_v54 = vrot.slane %v571_v62, %v5017_v53  ;;  %v1035_v15 = vshrl.u32 %v997_v55, 16 }
 0x1f0   :  { %4275 = vmatpush3.bf16.xpose.msra.mxu0 %v1658_v61  ;;  %4276 = vmatprep.mubr.msk.bf16.mxu0 %vm4762_vm0, %v4761_v0  ;;  %v5233_v48 = vrot.slane %v4060_v40, %v5017_v53  ;;  %v1750_v50 = vsel %vm1423_vm2, %v1030_v49, 0  ;;  %v536_v14 = vcombine.high %v534_v63, %v4772_v41  ;;  %v621_v46 = vcombine.low %v5220_v10, %v5223_v11 }
 0x1f1   :  { %4286 = vmatprep.subr.bf16.mxu0 %v4761_v0  ;;  %v1033_v51 = vpack.i.b16 %v997_v55, %v963_v52  ;;  %v661_v16 = vshrl.u32 %v570_v13, 16  ;;  %v1034_v17 = vshrl.u32 %v963_v52, 16  ;;  %v1005_v22 = vcombine.high %v997_v55, %v4772_v41 }
 0x1f2   :  { %v587_v18 = vcombine.low %v5230_v54, %v5233_v48  ;;  %v659_v19 = vpack.i.b16 %v570_v13, %v536_v14  ;;  %v660_v20 = vshrl.u32 %v536_v14, 16  ;;  %v629_v28 = vrot.slane %v621_v46, %v5042_v12 }
 0x1f3   :  { %v1036_v21 = vpack.i.b16 %v1035_v15, %v1034_v17  ;;  %v1796_v23 = vsel %vm1423_vm2, %v1033_v51, 0  ;;  %v971_v29 = vcombine.high %v963_v52, %v4772_v41  ;;  %v1041_v32 = vshrl.u32 %v1005_v22, 16 }
 0x1f4   :  { %v662_v4 = vpack.i.b16 %v661_v16, %v660_v20  ;;  %v595_v31 = vrot.slane %v587_v18, %v5042_v12  ;;  %v990_v59 = vcombine.high %v5186_v38, %v5189_v39  ;;  %v667_v34 = vshrl.u32 %v629_v28, 16 }
 0x1f5   :  { %4271 = vmatmul.mubr.msk.bf16.vlgmr.msra.gmra.mrb[12].mxu1 %vm1423_vm2, %v653_v44  ;;  %v1842_v30 = vsel %vm1423_vm2, %v1036_v21, 0  ;;  %v1039_v1 = vpack.i.b16 %v1005_v22, %v971_v29  ;;  %v1040_v37 = vshrl.u32 %v971_v29, 16  ;;  %v956_v42 = vcombine.high %v5192_v35, %v5195_v36 }
 0x1f6   :  { %4281 = vmatpush3.bf16.xpose.msra.mxu1 %v1704_v47  ;;  %4282 = vmatprep.mubr.msk.bf16.mxu1 %vm4762_vm0, %v4761_v0  ;;  %v665_v24 = vpack.i.b16 %v629_v28, %v595_v31  ;;  %v666_v3 = vshrl.u32 %v595_v31, 16  ;;  %v1004_v45 = vrot.slane %v990_v59, %v5042_v12  ;;  %v637_v56 = vcombine.high %v629_v28, %v4772_v41 }
 0x1f7   :  { %4277 = vmatmul.mubr.msk.bf16.vlgmr.msra.gmra.mrb[16].mxu0 %vm1423_vm2, %v656_v25  ;;  %4292 = vmatprep.subr.bf16.mxu1 %v4761_v0  ;;  %v1042_v43 = vpack.i.b16 %v1041_v32, %v1040_v37  ;;  %v1888_v38 = vsel %vm1423_vm2, %v1039_v1, 0  ;;  %v970_v57 = vrot.slane %v956_v42, %v5042_v12  ;;  %v603_v36 = vcombine.high %v595_v31, %v4772_v41 }
 0x1f8   :  { %4287 = vmatpush3.bf16.xpose.msra.mxu0 %v1750_v50  ;;  %4288 = vmatprep.mubr.msk.bf16.mxu0 %vm4762_vm0, %v4761_v0  ;;  %v668_v39 = vpack.i.b16 %v667_v34, %v666_v3  ;;  %v1047_v60 = vshrl.u32 %v1004_v45, 16  ;;  %v622_v61 = vcombine.high %v5220_v10, %v5223_v11  ;;  %v673_v2 = vshrl.u32 %v637_v56, 16 }
 0x1f9   :  { %4298 = vmatprep.subr.bf16.mxu0 %v4761_v0  ;;  %v1934_v35 = vsel %vm1423_vm2, %v1042_v43, 0  ;;  %v1045_v63 = vpack.i.b16 %v1004_v45, %v970_v57  ;;  %v1046_v5 = vshrl.u32 %v970_v57, 16  ;;  %v588_v6 = vcombine.high %v5230_v54, %v5233_v48 }
 0x1fa   :  { %v671_v7 = vpack.i.b16 %v637_v56, %v603_v36  ;;  %v672_v8 = vshrl.u32 %v603_v36, 16  ;;  %v1006_v26 = vcombine.high %v1004_v45, %v4772_v41  ;;  %v636_v40 = vrot.slane %v622_v61, %v5042_v12 }
 0x1fb   :  { %v1048_v58 = vpack.i.b16 %v1047_v60, %v1046_v5  ;;  %v1980_v27 = vsel %vm1423_vm2, %v1045_v63, 0  ;;  %v972_v44 = vcombine.high %v970_v57, %v4772_v41  ;;  %v602_v49 = vrot.slane %v588_v6, %v5042_v12 }
 0x1fc   :  { %v674_v62 = vpack.i.b16 %v673_v2, %v672_v8  ;;  %v1053_v55 = vshrl.u32 %v1006_v26, 16  ;;  %v679_v11 = vshrl.u32 %v636_v40, 16  ;;  %v638_v50 = vcombine.high %v636_v40, %v4772_v41 }
 0x1fd   :  { %4283 = vmatmul.mubr.msk.bf16.vlgmr.msra.gmra.mrb[16].mxu1 %vm1423_vm2, %v659_v19  ;;  %v2026_v9 = vsel %vm1423_vm2, %v1048_v58, 0  ;;  %v1051_v10 = vpack.i.b16 %v1006_v26, %v972_v44  ;;  %v1052_v47 = vshrl.u32 %v972_v44, 16  ;;  %v677_v25 = vpack.i.b16 %v636_v40, %v602_v49 }
 0x1fe   :  { %4293 = vmatpush3.bf16.xpose.msra.mxu1 %v1796_v23  ;;  %4294 = vmatprep.mubr.msk.bf16.mxu1 %vm4762_vm0, %v4761_v0  ;;  %v678_v13 = vshrl.u32 %v602_v49, 16  ;;  %v604_v15 = vcombine.high %v602_v49, %v4772_v41  ;;  %v685_v46 = vshrl.u32 %v638_v50, 16 }
 0x1ff   :  { %4289 = vmatmul.mubr.msk.bf16.vlgmr.msra.gmra.mrb[20].mxu0 %vm1423_vm2, %v662_v4  ;;  %4304 = vmatprep.subr.bf16.mxu1 %v4761_v0  ;;  %v1054_v52 = vpack.i.b16 %v1053_v55, %v1052_v47  ;;  %v2072_v54 = vsel %vm1423_vm2, %v1051_v10, 0 }
 0x200   :  { %4299 = vmatpush3.bf16.xpose.msra.mxu0 %v1842_v30  ;;  %4300 = vmatprep.mubr.msk.bf16.mxu0 %vm4762_vm0, %v4761_v0  ;;  %v680_v48 = vpack.i.b16 %v679_v11, %v678_v13  ;;  %v683_v51 = vpack.i.b16 %v638_v50, %v604_v15  ;;  %v684_v16 = vshrl.u32 %v604_v15, 16 }
 0x201   :  { %4310 = vmatprep.subr.bf16.mxu0 %v4761_v0  ;;  %v2118_v14 = vsel %vm1423_vm2, %v1054_v52, 0 }
 0x202   :  { %v686_v17 = vpack.i.b16 %v685_v46, %v684_v16 }
 0x205   :  { %4295 = vmatmul.mubr.msk.bf16.vlgmr.msra.gmra.mrb[20].mxu1 %vm1423_vm2, %v665_v24 }
 0x206   :  { %4305 = vmatpush3.bf16.xpose.msra.mxu1 %v1888_v38  ;;  %4306 = vmatprep.mubr.msk.bf16.mxu1 %vm4762_vm0, %v4761_v0 }
 0x207   :  { %4301 = vmatmul.mubr.msk.bf16.vlgmr.msra.gmra.mrb[24].mxu0 %vm1423_vm2, %v668_v39  ;;  %4316 = vmatprep.subr.bf16.mxu1 %v4761_v0 }
 0x208   :  { %4311 = vmatpush3.bf16.xpose.msra.mxu0 %v1934_v35  ;;  %4312 = vmatprep.mubr.msk.bf16.mxu0 %vm4762_vm0, %v4761_v0 }
 0x209   :  { %4322 = vmatprep.subr.bf16.mxu0 %v4761_v0 }
 0x20d   :  { %4307 = vmatmul.mubr.msk.bf16.vlgmr.msra.gmra.mrb[24].mxu1 %vm1423_vm2, %v671_v7 }
 0x20e   :  { %4317 = vmatpush3.bf16.xpose.msra.mxu1 %v1980_v27  ;;  %4318 = vmatprep.mubr.msk.bf16.mxu1 %vm4762_vm0, %v4761_v0 }
 0x20f   :  { %4313 = vmatmul.mubr.msk.bf16.vlgmr.msra.gmra.mrb[28].mxu0 %vm1423_vm2, %v674_v62  ;;  %4328 = vmatprep.subr.bf16.mxu1 %v4761_v0 }
 0x210   :  { %4323 = vmatpush3.bf16.xpose.msra.mxu0 %v2026_v9  ;;  %4324 = vmatprep.mubr.msk.bf16.mxu0 %vm4762_vm0, %v4761_v0 }
 0x211   :  { %4334 = vmatprep.subr.bf16.mxu0 %v4761_v0 }
 0x215   :  { %4319 = vmatmul.mubr.msk.bf16.vlgmr.msra.gmra.mrb[28].mxu1 %vm1423_vm2, %v677_v25 }
 0x216   :  { %4329 = vmatpush3.bf16.xpose.msra.mxu1 %v2072_v54  ;;  %4330 = vmatprep.mubr.msk.bf16.mxu1 %vm4762_vm0, %v4761_v0 }
 0x217   :  { %4325 = vmatmul.mubr.msk.bf16.vlgmr.msra.gmra.mrb[32].mxu0 %vm1423_vm2, %v680_v48  ;;  %4340 = vmatprep.subr.bf16.mxu1 %v4761_v0 }
 0x218   :  { %4335 = vmatpush3.bf16.xpose.msra.mxu0 %v2118_v14  ;;  %4336 = vmatprep.mubr.msk.bf16.mxu0 %vm4762_vm0, %v4761_v0 }
 0x219   :  { %4346 = vmatprep.subr.bf16.mxu0 %v4761_v0 }
 0x21d   :  { %4331 = vmatmul.mubr.msk.bf16.vlgmr.msra.gmra.mrb[32].mxu1 %vm1423_vm2, %v683_v51 }
 0x21e   :  { %4342 = vmatprep.mubr.msk.bf16.mxu1 %vm4762_vm0, %v4761_v0 }
 0x21f   :  { %4337 = vmatmul.mubr.msk.bf16.vlgmr.msra.gmra.mrb[36].mxu0 %vm1423_vm2, %v686_v17 }
 0x220   :  { %4348 = vmatprep.mubr.msk.bf16.mxu0 %vm4762_vm0, %v4761_v0 }
 0x2b8   :  { %v5316_v18 = vpop.f32.mrb[4].mxu1 }
 0x2b9   :  { %v4248_v19 = vpop.f32.mrb[5].mxu1  ;;  %v2161_v20 = vsel %vm2160_vm3, %v5316_v18, -inf }
 0x2ba   :  { %v1467_v21 = vpop.f32.mrb[6].mxu1  ;;  %2162 = vmax.xlane.f32.xlu0 %v2161_v20  ;;  %v5320_v22 = vpop.f32.mrb[8].mxu0 }
 0x2bb   :  { %v4249_v23 = vpop.f32.mrb[7].mxu1  ;;  %v4254_v4 = vpop.f32.mrb[9].mxu0  ;;  %v2164_v28 = vsel %vm2160_vm3, %v5320_v22, -inf }
 0x2bc   :  { %2165 = vmax.xlane.f32.xlu1 %v2164_v28  ;;  %v1513_v29 = vpop.f32.mrb[10].mxu0 }
 0x2bd   :  { %v4255_v30 = vpop.f32.mrb[11].mxu0 }
 0x2c0   :  { %v5324_v31 = vpop.f32.mrb[8].mxu1 }
 0x2c1   :  { %v4260_v32 = vpop.f32.mrb[9].mxu1  ;;  %v2167_v59 = vsel %vm2160_vm3, %v5324_v31, -inf }
 0x2c2   :  { %v1559_v1 = vpop.f32.mrb[10].mxu1  ;;  %2168 = vmax.xlane.f32.xlu0 %v2167_v59  ;;  %v5328_v34 = vpop.f32.mrb[12].mxu0 }
 0x2c3   :  { %v4261_v37 = vpop.f32.mrb[11].mxu1  ;;  %v4266_v42 = vpop.f32.mrb[13].mxu0  ;;  %v2170_v43 = vsel %vm2160_vm3, %v5328_v34, -inf }
 0x2c4   :  { %v1605_v24 = vpop.f32.mrb[14].mxu0 }
 0x2c5   :  { %v4267_v3 = vpop.f32.mrb[15].mxu0 }
 0x2c6   :  { %2171 = vmax.xlane.f32.xlu0 %v2170_v43 }
 0x2c8   :  { %v5332_v45 = vpop.f32.mrb[12].mxu1 }
 0x2c9   :  { %v4272_v38 = vpop.f32.mrb[13].mxu1  ;;  %v2173_v39 = vsel %vm2160_vm3, %v5332_v45, -inf }
 0x2ca   :  { %v1651_v56 = vpop.f32.mrb[14].mxu1  ;;  %2174 = vmax.xlane.f32.xlu1 %v2173_v39  ;;  %v5336_v57 = vpop.f32.mrb[16].mxu0 }
 0x2cb   :  { %v4273_v35 = vpop.f32.mrb[15].mxu1  ;;  %v4278_v36 = vpop.f32.mrb[17].mxu0  ;;  %v2176_v60 = vsel %vm2160_vm3, %v5336_v57, -inf }
 0x2cc   :  { %2177 = vmax.xlane.f32.xlu0 %v2176_v60  ;;  %v1697_v61 = vpop.f32.mrb[18].mxu0  ;;  %v5384_v60 = vpop.permute.xlu1 %1057 }
 0x2cd   :  { %v4279_v63 = vpop.f32.mrb[19].mxu0  ;;  %v5386_v61 = vpop.permute.xlu0 %1059 }
 0x2d0   :  { %v5340_v2 = vpop.f32.mrb[16].mxu1  ;;  %v5388_v63 = vpop.permute.xlu1 %1061 }
 0x2d1   :  { %v4284_v5 = vpop.f32.mrb[17].mxu1  ;;  %v2179_v37 = vsel %vm2160_vm3, %v5340_v2, -inf }
 0x2d2   :  { %v1743_v6 = vpop.f32.mrb[18].mxu1  ;;  %v5342_v7 = vpop.f32.mrb[20].mxu0 }
 0x2d3   :  { %v4285_v8 = vpop.f32.mrb[19].mxu1  ;;  %v4290_v58 = vpop.f32.mrb[21].mxu0  ;;  %v2182_v42 = vsel %vm2160_vm3, %v5342_v7, -inf }
 0x2d4   :  { %v1789_v26 = vpop.f32.mrb[22].mxu0 }
 0x2d5   :  { %v4291_v27 = vpop.f32.mrb[23].mxu0 }
 0x2d8   :  { %v5344_v62 = vpop.f32.mrb[20].mxu1 }
 0x2d9   :  { %v4296_v40 = vpop.f32.mrb[21].mxu1  ;;  %v2185_v24 = vsel %vm2160_vm3, %v5344_v62, -inf }
 0x2da   :  { %v1835_v44 = vpop.f32.mrb[22].mxu1  ;;  %v5346_v9 = vpop.f32.mrb[24].mxu0 }
 0x2db   :  { %v4297_v49 = vpop.f32.mrb[23].mxu1  ;;  %1063 = vrot.lane.b32.xlu1 %v5006_v33, %s4765_s2  ;;  %v4302_v55 = vpop.f32.mrb[25].mxu0  ;;  %v2188_v3 = vsel %vm2160_vm3, %v5346_v9, -inf }
 0x2dc   :  { %v1881_v10 = vpop.f32.mrb[26].mxu0 }
 0x2dd   :  { %v4303_v11 = vpop.f32.mrb[27].mxu0 }
 0x2e0   :  { %v5350_v47 = vpop.f32.mrb[24].mxu1 }
 0x2e1   :  { %v4308_v25 = vpop.f32.mrb[25].mxu1  ;;  %v2191_v43 = vsel %vm2160_vm3, %v5350_v47, -inf }
 0x2e2   :  { %v1927_v13 = vpop.f32.mrb[26].mxu1  ;;  %1065 = vrot.lane.b32.xlu0 %v5006_v33, %s4768_s9  ;;  %v5354_v52 = vpop.f32.mrb[28].mxu0 }
 0x2e3   :  { %v4309_v54 = vpop.f32.mrb[27].mxu1  ;;  %v4314_v48 = vpop.f32.mrb[29].mxu0  ;;  %v2194_v38 = vsel %vm2160_vm3, %v5354_v52, -inf }
 0x2e4   :  { %v1973_v50 = vpop.f32.mrb[30].mxu0 }
 0x2e5   :  { %v4315_v14 = vpop.f32.mrb[31].mxu0 }
 0x2e8   :  { %v5356_v15 = vpop.f32.mrb[28].mxu1 }
 0x2e9   :  { %v4320_v46 = vpop.f32.mrb[29].mxu1  ;;  %v2197_v39 = vsel %vm2160_vm3, %v5356_v15, -inf }
 0x2ea   :  { %v2019_v51 = vpop.f32.mrb[30].mxu1  ;;  %v5358_v16 = vpop.f32.mrb[32].mxu0 }
 0x2eb   :  { %v4321_v17 = vpop.f32.mrb[31].mxu1  ;;  %v4326_v19 = vpop.f32.mrb[33].mxu0  ;;  %v2200_v56 = vsel %vm2160_vm3, %v5358_v16, -inf }
 0x2ec   :  { %v2065_v20 = vpop.f32.mrb[34].mxu0 }
 0x2ed   :  { %v4327_v21 = vpop.f32.mrb[35].mxu0 }
 0x2f0   :  { %v5360_v23 = vpop.f32.mrb[32].mxu1 }
 0x2f1   :  { %v4332_v4 = vpop.f32.mrb[33].mxu1  ;;  %v2203_v35 = vsel %vm2160_vm3, %v5360_v23, -inf }
 0x2f2   :  { %v2111_v28 = vpop.f32.mrb[34].mxu1  ;;  %v5362_v29 = vpop.f32.mrb[36].mxu0 }
 0x2f3   :  { %v4333_v30 = vpop.f32.mrb[35].mxu1  ;;  %v4338_v32 = vpop.f32.mrb[37].mxu0  ;;  %v2206_v36 = vsel %vm2160_vm3, %v5362_v29, -inf }
 0x2f4   :  { %v2157_v59 = vpop.f32.mrb[38].mxu0 }
 0x2f5   :  { %v4339_v1 = vpop.f32.mrb[39].mxu0 }
 0x2ff   :  { %2180 = vmax.xlane.f32.xlu1 %v2179_v37 }
 0x301   :  { %2183 = vmax.xlane.f32.xlu0 %v2182_v42 }
 0x303   :  { %2186 = vmax.xlane.f32.xlu1 %v2185_v24 }
 0x305   :  { %2189 = vmax.xlane.f32.xlu0 %v2188_v3 }
 0x307   :  { %2192 = vmax.xlane.f32.xlu1 %v2191_v43 }
 0x309   :  { %2195 = vmax.xlane.f32.xlu0 %v2194_v38 }
 0x30b   :  { %2198 = vmax.xlane.f32.xlu1 %v2197_v39 }
 0x30d   :  { %2201 = vmax.xlane.f32.xlu0 %v2200_v56 }
 0x30f   :  { %2204 = vmax.xlane.f32.xlu1 %v2203_v35 }
 0x311   :  { %2207 = vmax.xlane.f32.xlu0 %v2206_v36 }
 0x347   :  { %v2163_v5 = vpop.xlane.xlu0 %2162 }
 0x348   :  { %v2209_v6 = vsub.f32 %v5316_v18, %v2163_v5 }
 0x349   :  { %v2166_v8 = vpop.xlane.xlu1 %2165 }
 0x34a   :  { %v2225_v58 = vmul.f32 1.442695, %v2209_v6  ;;  %v2210_v26 = vsub.f32 %v5320_v22, %v2166_v8 }
 0x34c   :  { %4540 = vpow2.f32 %v2225_v58  ;;  %v2227_v27 = vmul.f32 1.442695, %v2210_v26 }
 0x34e   :  { %4542 = vpow2.f32 %v2227_v27 }
 0x34f   :  { %v2169_v40 = vpop.xlane.xlu0 %2168 }
 0x350   :  { %v2211_v46 = vsub.f32 %v5324_v31, %v2169_v40 }
 0x352   :  { %v2229_v17 = vmul.f32 1.442695, %v2211_v46 }
 0x353   :  { %v2172_v44 = vpop.xlane.xlu0 %2171 }
 0x354   :  { %v2212_v51 = vsub.f32 %v5328_v34, %v2172_v44  ;;  %4544 = vpow2.f32 %v2229_v17 }
 0x356   :  { %v5392_v49 = vpop.eup %4540  ;;  %v2231_v20 = vmul.f32 1.442695, %v2212_v51 }
 0x357   :  { %v2175_v55 = vpop.xlane.xlu1 %2174  ;;  %v2257_v10 = vsel %vm2160_vm3, %v5392_v49, 0.0 }
 0x358   :  { %v5396_v11 = vpop.eup %4542  ;;  %2258 = vadd.xlane.f32.xlu1 %v2257_v10  ;;  %v2213_v21 = vsub.f32 %v5332_v45, %v2175_v55  ;;  %4546 = vpow2.f32 %v2231_v20 }
 0x359   :  { %v2178_v25 = vpop.xlane.xlu0 %2177  ;;  %v2260_v18 = vsel %vm2160_vm3, %v5396_v11, 0.0 }
 0x35a   :  { %2261 = vadd.xlane.f32.xlu0 %v2260_v18  ;;  %v2214_v19 = vsub.f32 %v5336_v57, %v2178_v25  ;;  %v2233_v28 = vmul.f32 1.442695, %v2213_v21 }
 0x35b   :  { %v1064_v22 = vpop.permute.xlu1 %1063 }
 0x35c   :  { %v1091_v54 = vshrl.u32 %v1064_v22, 16  ;;  %v2235_v4 = vmul.f32 1.442695, %v2214_v19 }
 0x35d   :  { %v1066_v13 = vpop.permute.xlu0 %1065 }
 0x35e   :  { %v5400_v48 = vpack.i.b16 %v1066_v13, %v1064_v22  ;;  %v1092_v50 = vshrl.u32 %v1066_v13, 16  ;;  %4548 = vpow2.f32 %v2235_v4  ;;  %v5412_v30 = vpop.eup %4544 }
 0x35f   :  { %4550 = vpow2.f32 %v2233_v28  ;;  %v2263_v31 = vsel %vm2160_vm3, %v5412_v30, 0.0 }
 0x360   :  { %v5402_v14 = vpack.i.b16 %v1092_v50, %v1091_v54 }
 0x362   :  { %v5414_v32 = vpop.eup %4546 }
 0x363   :  { %v2266_v1 = vsel %vm2160_vm3, %v5414_v32, 0.0 }
 0x368   :  { %v5418_v34 = vpop.eup %4548 }
 0x369   :  { %1067 = vrot.lane.b32.xlu1 %v5006_v33, %s4767_s6  ;;  %v5423_v37 = vpop.eup %4550  ;;  %v2272_v43 = vsel %vm2160_vm3, %v5418_v34, 0.0 }
 0x36a   :  { %v2269_v56 = vsel %vm2160_vm3, %v5423_v37, 0.0 }
 0x370   :  { %1069 = vrot.lane.b32.xlu0 %v5006_v33, %s4769_s20 }
 0x38c   :  { %v2181_v59 = vpop.xlane.xlu1 %2180 }
 0x38d   :  { %v2215_v57 = vsub.f32 %v5340_v2, %v2181_v59  ;;  %2264 = vadd.xlane.f32.xlu1 %v2263_v31 }
 0x38e   :  { %v2184_v45 = vpop.xlane.xlu0 %2183 }
 0x38f   :  { %v2237_v42 = vmul.f32 1.442695, %v2215_v57  ;;  %v2216_v24 = vsub.f32 %v5342_v7, %v2184_v45  ;;  %2267 = vadd.xlane.f32.xlu0 %v2266_v1 }
 0x390   :  { %v2187_v3 = vpop.xlane.xlu1 %2186 }
 0x391   :  { %4552 = vpow2.f32 %v2237_v42  ;;  %v2239_v38 = vmul.f32 1.442695, %v2216_v24  ;;  %v2217_v39 = vsub.f32 %v5344_v62, %v2187_v3  ;;  %2273 = vadd.xlane.f32.xlu1 %v2272_v43  ;;  %v1073_v43 = vpack.i.b16 %v5384_v60, %v5006_v33 }
 0x392   :  { %v2190_v2 = vpop.xlane.xlu0 %2189 }
 0x393   :  { %4554 = vpow2.f32 %v2239_v38  ;;  %v2241_v35 = vmul.f32 1.442695, %v2217_v39  ;;  %v2218_v36 = vsub.f32 %v5346_v9, %v2190_v2  ;;  %2270 = vadd.xlane.f32.xlu0 %v2269_v56  ;;  %v1075_v38 = vshrl.u32 %v5006_v33, 16 }
 0x394   :  { %v2193_v7 = vpop.xlane.xlu1 %2192  ;;  %v1076_v39 = vshrl.u32 %v5384_v60, 16  ;;  %v1083_v2 = vshrl.u32 %v5386_v61, 16  ;;  %v1084_v56 = vshrl.u32 %v5388_v63, 16 }
 0x395   :  { %4556 = vpow2.f32 %v2241_v35  ;;  %v2243_v5 = vmul.f32 1.442695, %v2218_v36  ;;  %v2219_v6 = vsub.f32 %v5350_v47, %v2193_v7  ;;  %v1103_v36 = vcombine.low %v1073_v43, %v5400_v48 }
 0x396   :  { %v2196_v8 = vpop.xlane.xlu0 %2195  ;;  %v1104_v7 = vcombine.high %v1073_v43, %v5400_v48  ;;  %v1085_v33 = vpack.i.b16 %v1084_v56, %v1083_v2 }
 0x397   :  { %4558 = vpow2.f32 %v2243_v5  ;;  %v2245_v58 = vmul.f32 1.442695, %v2219_v6  ;;  %v2220_v62 = vsub.f32 %v5354_v52, %v2196_v8  ;;  %v1081_v6 = vpack.i.b16 %v5388_v63, %v5386_v61 }
 0x398   :  { %v2199_v26 = vpop.xlane.xlu1 %2198  ;;  %v1111_v60 = vrot.slane %v1103_v36, %v5017_v53 }
 0x399   :  { %4560 = vpow2.f32 %v2245_v58  ;;  %v2247_v27 = vmul.f32 1.442695, %v2220_v62  ;;  %v2221_v40 = vsub.f32 %v5356_v15, %v2199_v26  ;;  %v1077_v26 = vpack.i.b16 %v1076_v39, %v1075_v38 }
 0x39a   :  { %v2202_v44 = vpop.xlane.xlu0 %2201 }
 0x39b   :  { %v5435_v55 = vpop.eup %4552  ;;  %4562 = vpow2.f32 %v2247_v27  ;;  %v2249_v9 = vmul.f32 1.442695, %v2221_v40  ;;  %v2222_v10 = vsub.f32 %v5358_v16, %v2202_v44  ;;  %v1172_v48 = vcombine.high %v1077_v26, %v5402_v14 }
 0x39c   :  { %v2205_v25 = vpop.xlane.xlu1 %2204  ;;  %v2275_v47 = vsel %vm2160_vm3, %v5435_v55, 0.0 }
 0x39d   :  { %v5440_v18 = vpop.eup %4554  ;;  %4564 = vpow2.f32 %v2249_v9  ;;  %v2251_v52 = vmul.f32 1.442695, %v2222_v10  ;;  %v2223_v22 = vsub.f32 %v5360_v23, %v2205_v25  ;;  %2276 = vadd.xlane.f32.xlu0 %v2275_v47  ;;  %v1118_v9 = vrot.slane %v1104_v7, %v5017_v53 }
 0x39e   :  { %v2208_v13 = vpop.xlane.xlu0 %2207  ;;  %v2278_v15 = vsel %vm2160_vm3, %v5440_v18, 0.0  ;;  %v1171_v10 = vcombine.low %v1077_v26, %v5402_v14 }
 0x39f   :  { %v5445_v54 = vpop.eup %4556  ;;  %4566 = vpow2.f32 %v2251_v52  ;;  %v2253_v50 = vmul.f32 1.442695, %v2223_v22  ;;  %v2224_v16 = vsub.f32 %v5362_v29, %v2208_v13  ;;  %2279 = vadd.xlane.f32.xlu1 %v2278_v15 }
 0x3a0   :  { %v2281_v46 = vsel %vm2160_vm3, %v5445_v54, 0.0 }
 0x3a1   :  { %v5450_v51 = vpop.eup %4558  ;;  %4568 = vpow2.f32 %v2253_v50  ;;  %v2255_v17 = vmul.f32 1.442695, %v2224_v16  ;;  %2282 = vadd.xlane.f32.xlu0 %v2281_v46  ;;  %v1179_v50 = vrot.slane %v1171_v10, %v5017_v53  ;;  %v1186_v16 = vrot.slane %v1172_v48, %v5017_v53 }
 0x3a2   :  { %v2284_v23 = vsel %vm2160_vm3, %v5450_v51, 0.0 }
 0x3a3   :  { %v5454_v19 = vpop.eup %4560  ;;  %4570 = vpow2.f32 %v2255_v17  ;;  %2285 = vadd.xlane.f32.xlu1 %v2284_v23 }
 0x3a4   :  { %v2287_v20 = vsel %vm2160_vm3, %v5454_v19, 0.0 }
 0x3a5   :  { %v5458_v29 = vpop.eup %4562  ;;  %2288 = vadd.xlane.f32.xlu0 %v2287_v20 }
 0x3a6   :  { %v2290_v21 = vsel %vm2160_vm3, %v5458_v29, 0.0 }
 0x3a7   :  { %v5462_v4 = vpop.eup %4564  ;;  %2291 = vadd.xlane.f32.xlu1 %v2290_v21 }
 0x3a8   :  { %v2293_v28 = vsel %vm2160_vm3, %v5462_v4, 0.0 }
 0x3a9   :  { %v5466_v59 = vpop.eup %4566  ;;  %2294 = vadd.xlane.f32.xlu0 %v2293_v28 }
 0x3aa   :  { %v2296_v31 = vsel %vm2160_vm3, %v5466_v59, 0.0 }
 0x3ab   :  { %v5470_v57 = vpop.eup %4568  ;;  %2297 = vadd.xlane.f32.xlu1 %v2296_v31 }
 0x3ac   :  { %v2299_v45 = vsel %vm2160_vm3, %v5470_v57, 0.0 }
 0x3ad   :  { %v5474_v1 = vpop.eup %4570  ;;  %2300 = vadd.xlane.f32.xlu0 %v2299_v45 }
 0x3ae   :  { %v2302_v42 = vsel %vm2160_vm3, %v5474_v1, 0.0 }
 0x3af   :  { %2303 = vadd.xlane.f32.xlu1 %v2302_v42 }
 0x3e5   :  { %v2259_v24 = vpop.xlane.xlu1 %2258 }
 0x3e6   :  { %4572 = vrcp.f32 %v2259_v24 }
 0x3e7   :  { %v2262_v3 = vpop.xlane.xlu0 %2261 }
 0x3e8   :  { %4574 = vrcp.f32 %v2262_v3 }
 0x3e9   :  { %v1068_v35 = vpop.permute.xlu1 %1067 }
 0x3ea   :  { %v1099_v8 = vshrl.u32 %v1068_v35, 16 }
 0x3eb   :  { %v1070_v5 = vpop.permute.xlu0 %1069 }
 0x3ec   :  { %v1097_v58 = vpack.i.b16 %v1070_v5, %v1068_v35  ;;  %v1100_v62 = vshrl.u32 %v1070_v5, 16 }
 0x3ee   :  { %v1101_v27 = vpack.i.b16 %v1100_v62, %v1099_v8  ;;  %v1119_v40 = vcombine.low %v1081_v6, %v1097_v58  ;;  %v1120_v44 = vcombine.high %v1081_v6, %v1097_v58 }
 0x3f0   :  { %v1127_v61 = vrot.slane %v1119_v40, %v5017_v53  ;;  %v1134_v63 = vrot.slane %v1120_v44, %v5017_v53  ;;  %v1187_v25 = vcombine.low %v1085_v33, %v1101_v27  ;;  %v1188_v47 = vcombine.high %v1085_v33, %v1101_v27  ;;  %v4573_v39 = vpop.eup %4572 }
 0x3f1   :  { %v2306_v27 = vmul.f32 %v4573_v39, %v5392_v49 }
 0x3f2   :  { %v1135_v52 = vcombine.low %v1111_v60, %v1127_v61  ;;  %v1136_v22 = vcombine.high %v1111_v60, %v1127_v61  ;;  %v1151_v13 = vcombine.low %v1118_v9, %v1134_v63  ;;  %v1152_v15 = vcombine.high %v1118_v9, %v1134_v63  ;;  %v4575_v58 = vpop.eup %4574 }
 0x3f3   :  { %v1195_v46 = vrot.slane %v1187_v25, %v5017_v53  ;;  %v1202_v17 = vrot.slane %v1188_v47, %v5017_v53  ;;  %v2308_v25 = vmul.f32 %v4575_v58, %v5396_v11 }
 0x3f4   :  { %v1143_v14 = vrot.slane %v1135_v52, %v5042_v12  ;;  %v1150_v23 = vrot.slane %v1136_v22, %v5042_v12  ;;  %v1159_v20 = vrot.slane %v1151_v13, %v5042_v12  ;;  %v1166_v21 = vrot.slane %v1152_v15, %v5042_v12 }
 0x3f5   :  { %v1203_v28 = vcombine.low %v1179_v50, %v1195_v46  ;;  %v1204_v31 = vcombine.high %v1179_v50, %v1195_v46  ;;  %v1219_v45 = vcombine.low %v1186_v16, %v1202_v17  ;;  %v1220_v42 = vcombine.high %v1186_v16, %v1202_v17 }
 0x3f6   :  { %v1239_v24 = vcombine.low %v1143_v14, %v1150_v23  ;;  %v4066_v3 = vcombine.high %v1143_v14, %v1150_v23  ;;  %v1307_v43 = vcombine.low %v1159_v20, %v1166_v21  ;;  %v4068_v38 = vcombine.high %v1159_v20, %v1166_v21 }
 0x3f7   :  { %v1211_v2 = vrot.slane %v1203_v28, %v5042_v12  ;;  %v1218_v56 = vrot.slane %v1204_v31, %v5042_v12  ;;  %v1227_v35 = vrot.slane %v1219_v45, %v5042_v12  ;;  %v1234_v36 = vrot.slane %v1220_v42, %v5042_v12 }
 0x3f8   :  { %v1246_v7 = vrot.slane %v1239_v24, %v5017_v53  ;;  %v1254_v5 = vrot.slane %v4066_v3, %v5017_v53  ;;  %v1314_v6 = vrot.slane %v1307_v43, %v5017_v53  ;;  %v1322_v8 = vrot.slane %v4068_v38, %v5017_v53 }
 0x3f9   :  { %v1273_v62 = vcombine.low %v1211_v2, %v1218_v56  ;;  %v4067_v26 = vcombine.high %v1211_v2, %v1218_v56  ;;  %v1341_v33 = vcombine.low %v1227_v35, %v1234_v36  ;;  %v4069_v60 = vcombine.high %v1227_v35, %v1234_v36 }
 0x3fa   :  { %v1255_v40 = vcombine.low %v1246_v7, %v1254_v5  ;;  %v1256_v44 = vcombine.high %v1246_v7, %v1254_v5  ;;  %v1323_v9 = vcombine.low %v1314_v6, %v1322_v8  ;;  %v1324_v50 = vcombine.high %v1314_v6, %v1322_v8 }
 0x3fb   :  { %v1280_v10 = vrot.slane %v1273_v62, %v5017_v53  ;;  %v1288_v48 = vrot.slane %v4067_v26, %v5017_v53  ;;  %v1348_v61 = vrot.slane %v1341_v33, %v5017_v53  ;;  %v1356_v63 = vrot.slane %v4069_v60, %v5017_v53 }
 0x3fc   :  { %v1263_v47 = vrot.slane %v1255_v40, %v5042_v12  ;;  %v5518_v52 = vrot.slane %v1256_v44, %v5042_v12  ;;  %v5521_v49 = vrot.slane %v1323_v9, %v5042_v12  ;;  %v1338_v26 = vrot.slane %v1324_v50, %v5042_v12 }
 0x3fd   :  { %v1289_v22 = vcombine.low %v1280_v10, %v1288_v48  ;;  %v1290_v13 = vcombine.high %v1280_v10, %v1288_v48  ;;  %v1357_v15 = vcombine.low %v1348_v61, %v1356_v63  ;;  %v1358_v11 = vcombine.high %v1348_v61, %v1356_v63 }
 0x3fe   :  { %v1378_v16 = vshrl.u32 %v1263_v47, 16  ;;  %v1271_v46 = vcombine.high %v1263_v47, %v4772_v41  ;;  %v5526_v17 = vcombine.high %v5518_v52, %v4772_v41  ;;  %v1390_v20 = vshrl.u32 %v5518_v52, 16 }
 0x3ff   :  { %v1297_v14 = vrot.slane %v1289_v22, %v5042_v12  ;;  %v5530_v23 = vrot.slane %v1290_v13, %v5042_v12  ;;  %v5534_v21 = vrot.slane %v1357_v15, %v5042_v12  ;;  %v1402_v45 = vshrl.u32 %v5521_v49, 16 }
 0x400   :  { %v1384_v28 = vshrl.u32 %v1271_v46, 16  ;;  %v1396_v31 = vshrl.u32 %v5526_v17, 16  ;;  %v5540_v42 = vcombine.high %v5521_v49, %v4772_v41  ;;  %v2337_v60 = vpack.c.bf16 %v2306_v27, %v2306_v27 }
 0x401   :  { %v1377_v24 = vpack.i.b16 %v1297_v14, %v1263_v47  ;;  %v1379_v3 = vshrl.u32 %v1297_v14, 16  ;;  %v1305_v43 = vcombine.high %v1297_v14, %v4772_v41  ;;  %v1389_v38 = vpack.i.b16 %v5530_v23, %v5518_v52 }
 0x402   :  { %v1391_v39 = vshrl.u32 %v5530_v23, 16  ;;  %v5548_v2 = vcombine.high %v5530_v23, %v4772_v41  ;;  %v1401_v56 = vpack.i.b16 %v5534_v21, %v5521_v49  ;;  %v1403_v35 = vshrl.u32 %v5534_v21, 16 }
 0x403   :  { %v2358_v36 = vsel %vm2356_vm4, %v1377_v24, 0  ;;  %v1380_v7 = vpack.i.b16 %v1379_v3, %v1378_v16  ;;  %v1383_v5 = vpack.i.b16 %v1305_v43, %v1271_v46  ;;  %v1385_v6 = vshrl.u32 %v1305_v43, 16 }
 0x404   :  { %4341 = vmatpush3.bf16.msra.mxu1 %v2358_v36  ;;  %v5554_v8 = vpack.i.b16 %v1391_v39, %v1390_v20  ;;  %v1395_v58 = vpack.i.b16 %v5548_v2, %v5526_v17  ;;  %v1397_v62 = vshrl.u32 %v5548_v2, 16  ;;  %v5564_v9 = vpack.i.b16 %v1403_v35, %v1402_v45 }
 0x405   :  { %v2404_v33 = vsel %vm2356_vm4, %v1380_v7, 0  ;;  %4352 = vmatprep.subr.bf16.mxu1 %v4761_v0  ;;  %v1386_v40 = vpack.i.b16 %v1385_v6, %v1384_v28  ;;  %v2450_v10 = vsel %vm2356_vm4, %v1383_v5, 0  ;;  %v2338_v48 = vpack.c.bf16 %v2308_v25, %v2308_v25 }
 0x406   :  { %4347 = vmatpush3.bf16.msra.mxu0 %v2404_v33  ;;  %v5562_v44 = vpack.i.b16 %v1397_v62, %v1396_v31  ;;  %v5571_v61 = vcombine.high %v5534_v21, %v4772_v41  ;;  %v1372_v27 = vrot.slane %v1358_v11, %v5042_v12  ;;  %v1408_v47 = vshrl.u32 %v5540_v42, 16 }
 0x407   :  { %4343 = vmatmul.mubr.msk.bf16.vlgmr.msra.gmra.mrb[36].mxu1 %vm2160_vm3, %v2337_v60  ;;  %4358 = vmatprep.subr.bf16.mxu0 %v4761_v0  ;;  %v2496_v63 = vsel %vm2356_vm4, %v1386_v40, 0  ;;  %v1414_v22 = vshrl.u32 %v1338_v26, 16  ;;  %v1340_v13 = vcombine.high %v1338_v26, %v4772_v41 }
 0x408   :  { %4353 = vmatpush3.bf16.msra.mxu1 %v2450_v10  ;;  %4354 = vmatprep.mubr.msk.bf16.mxu1 %vm4762_vm0, %v4761_v0  ;;  %v1407_v25 = vpack.i.b16 %v5571_v61, %v5540_v42  ;;  %v1409_v15 = vshrl.u32 %v5571_v61, 16  ;;  %v1413_v50 = vpack.i.b16 %v1372_v27, %v1338_v26  ;;  %v1415_v16 = vshrl.u32 %v1372_v27, 16 }
 0x409   :  { %4349 = vmatmul.mubr.msk.bf16.vlgmr.msra.gmra.mrb[40].mxu0 %vm2160_vm3, %v2338_v48  ;;  %4364 = vmatprep.subr.bf16.mxu1 %v4761_v0  ;;  %v1374_v46 = vcombine.high %v1372_v27, %v4772_v41  ;;  %v1420_v31 = vshrl.u32 %v1340_v13, 16  ;;  %v2542_v10 = vsel %vm2356_vm4, %v1389_v38, 0 }
 0x40a   :  { %4359 = vmatpush3.bf16.msra.mxu0 %v2496_v63  ;;  %4360 = vmatprep.mubr.msk.bf16.mxu0 %vm4762_vm0, %v4761_v0  ;;  %v1410_v11 = vpack.i.b16 %v1409_v15, %v1408_v47  ;;  %v5589_v14 = vsel %vm2356_vm4, %v1413_v50, 0  ;;  %v1416_v20 = vpack.i.b16 %v1415_v16, %v1414_v22  ;;  %v2588_v47 = vsel %vm2356_vm4, %v5554_v8, 0 }
 0x40b   :  { %4370 = vmatprep.subr.bf16.mxu0 %v4761_v0  ;;  %v1419_v28 = vpack.i.b16 %v1374_v46, %v1340_v13  ;;  %v1421_v45 = vshrl.u32 %v1374_v46, 16  ;;  %v2634_v8 = vsel %vm2356_vm4, %v1395_v58, 0  ;;  %v2680_v13 = vsel %vm2356_vm4, %v5562_v44, 0 }
 0x40c   :  { %v5592_v24 = vsel %vm2356_vm4, %v1410_v11, 0  ;;  %v5595_v3 = vsel %vm2356_vm4, %v1416_v20, 0  ;;  %v2726_v44 = vsel %vm2356_vm4, %v1401_v56, 0 }
 0x40d   :  { %v5598_v43 = vsel %vm2356_vm4, %v1419_v28, 0  ;;  %v1422_v41 = vpack.i.b16 %v1421_v45, %v1420_v31 }
 0x40f   :  { %v5601_v39 = vsel %vm2356_vm4, %v1422_v41, 0 }
 0x41a   :  { %v2265_v35 = vpop.xlane.xlu1 %2264 }
 0x41b   :  { %4576 = vrcp.f32 %v2265_v35 }
 0x41c   :  { %v2268_v36 = vpop.xlane.xlu0 %2267 }
 0x41d   :  { %4578 = vrcp.f32 %v2268_v36 }
 0x41e   :  { %v2274_v7 = vpop.xlane.xlu1 %2273 }
 0x41f   :  { %4580 = vrcp.f32 %v2274_v7 }
 0x420   :  { %v2271_v5 = vpop.xlane.xlu0 %2270 }
 0x421   :  { %4582 = vrcp.f32 %v2271_v5 }
 0x425   :  { %v4577_v6 = vpop.eup %4576 }
 0x426   :  { %v2310_v62 = vmul.f32 %v4577_v6, %v5412_v30 }
 0x427   :  { %v4579_v26 = vpop.eup %4578 }
 0x428   :  { %v2312_v33 = vmul.f32 %v4579_v26, %v5414_v32  ;;  %v2339_v60 = vpack.c.bf16 %v2310_v62, %v2310_v62 }
 0x429   :  { %v4581_v40 = vpop.eup %4580 }
 0x42a   :  { %4355 = vmatmul.mubr.msk.bf16.vlgmr.msra.gmra.mrb[40].mxu1 %vm2160_vm3, %v2339_v60  ;;  %v2277_v48 = vpop.xlane.xlu0 %2276  ;;  %v2340_v27 = vpack.c.bf16 %v2312_v33, %v2312_v33  ;;  %v2316_v52 = vmul.f32 %v4581_v40, %v5418_v34 }
 0x42b   :  { %v4583_v63 = vpop.eup %4582  ;;  %4365 = vmatpush3.bf16.msra.mxu1 %v2542_v10  ;;  %4584 = vrcp.f32 %v2277_v48  ;;  %4366 = vmatprep.mubr.msk.bf16.mxu1 %vm4762_vm0, %v4761_v0 }
 0x42c   :  { %v2314_v30 = vmul.f32 %v4583_v63, %v5423_v37  ;;  %v2280_v32 = vpop.xlane.xlu1 %2279  ;;  %4361 = vmatmul.mubr.msk.bf16.vlgmr.msra.gmra.mrb[44].mxu0 %vm2160_vm3, %v2340_v27  ;;  %4376 = vmatprep.subr.bf16.mxu1 %v4761_v0  ;;  %v2342_v22 = vpack.c.bf16 %v2316_v52, %v2316_v52 }
 0x42d   :  { %4586 = vrcp.f32 %v2280_v32  ;;  %4371 = vmatpush3.bf16.msra.mxu0 %v2588_v47  ;;  %4372 = vmatprep.mubr.msk.bf16.mxu0 %vm4762_vm0, %v4761_v0 }
 0x42e   :  { %v2283_v23 = vpop.xlane.xlu0 %2282  ;;  %4382 = vmatprep.subr.bf16.mxu0 %v4761_v0  ;;  %v2341_v38 = vpack.c.bf16 %v2314_v30, %v2314_v30 }
 0x42f   :  { %4588 = vrcp.f32 %v2283_v23 }
 0x430   :  { %v2286_v37 = vpop.xlane.xlu1 %2285 }
 0x431   :  { %4590 = vrcp.f32 %v2286_v37 }
 0x432   :  { %4367 = vmatmul.mubr.msk.bf16.vlgmr.msra.gmra.mrb[44].mxu1 %vm2160_vm3, %v2341_v38  ;;  %v2289_v34 = vpop.xlane.xlu0 %2288 }
 0x433   :  { %4377 = vmatpush3.bf16.msra.mxu1 %v2634_v8  ;;  %4378 = vmatprep.mubr.msk.bf16.mxu1 %vm4762_vm0, %v4761_v0  ;;  %4592 = vrcp.f32 %v2289_v34 }
 0x434   :  { %4373 = vmatmul.mubr.msk.bf16.vlgmr.msra.gmra.mrb[48].mxu0 %vm2160_vm3, %v2342_v22  ;;  %4388 = vmatprep.subr.bf16.mxu1 %v4761_v0  ;;  %v2292_v2 = vpop.xlane.xlu1 %2291 }
 0x435   :  { %v4585_v15 = vpop.eup %4584  ;;  %4383 = vmatpush3.bf16.msra.mxu0 %v2680_v13  ;;  %4384 = vmatprep.mubr.msk.bf16.mxu0 %vm4762_vm0, %v4761_v0  ;;  %4594 = vrcp.f32 %v2292_v2 }
 0x436   :  { %v2318_v17 = vmul.f32 %v4585_v15, %v5435_v55  ;;  %4394 = vmatprep.subr.bf16.mxu0 %v4761_v0  ;;  %v2295_v28 = vpop.xlane.xlu0 %2294 }
 0x437   :  { %v4587_v58 = vpop.eup %4586  ;;  %4596 = vrcp.f32 %v2295_v28 }
 0x438   :  { %v2320_v50 = vmul.f32 %v4587_v58, %v5440_v18  ;;  %v2343_v16 = vpack.c.bf16 %v2318_v17, %v2318_v17  ;;  %v2772_v18 = vsel %vm2356_vm4, %v5564_v9, 0  ;;  %v2298_v21 = vpop.xlane.xlu1 %2297  ;;  %v2818_v9 = vsel %vm2356_vm4, %v1407_v25, 0 }
 0x439   :  { %v4589_v46 = vpop.eup %4588  ;;  %4598 = vrcp.f32 %v2298_v21 }
 0x43a   :  { %4379 = vmatmul.mubr.msk.bf16.vlgmr.msra.gmra.mrb[48].mxu1 %vm2160_vm3, %v2343_v16  ;;  %v2344_v11 = vpack.c.bf16 %v2320_v50, %v2320_v50  ;;  %v2322_v55 = vmul.f32 %v4589_v46, %v5445_v54  ;;  %v2301_v41 = vpop.xlane.xlu0 %2300 }
 0x43b   :  { %v4591_v20 = vpop.eup %4590  ;;  %4389 = vmatpush3.bf16.msra.mxu1 %v2726_v44  ;;  %4390 = vmatprep.mubr.msk.bf16.mxu1 %vm4762_vm0, %v4761_v0  ;;  %4600 = vrcp.f32 %v2301_v41 }
 0x43c   :  { %4385 = vmatmul.mubr.msk.bf16.vlgmr.msra.gmra.mrb[52].mxu0 %vm2160_vm3, %v2344_v11  ;;  %4400 = vmatprep.subr.bf16.mxu1 %v4761_v0  ;;  %v2324_v49 = vmul.f32 %v4591_v20, %v5450_v51  ;;  %v2345_v56 = vpack.c.bf16 %v2322_v55, %v2322_v55  ;;  %v2304_v61 = vpop.xlane.xlu1 %2303 }
 0x43d   :  { %4395 = vmatpush3.bf16.msra.mxu0 %v2772_v18  ;;  %4396 = vmatprep.mubr.msk.bf16.mxu0 %vm4762_vm0, %v4761_v0  ;;  %v4593_v54 = vpop.eup %4592  ;;  %4602 = vrcp.f32 %v2304_v61 }
 0x43e   :  { %4406 = vmatprep.subr.bf16.mxu0 %v4761_v0  ;;  %v2346_v31 = vpack.c.bf16 %v2324_v49, %v2324_v49  ;;  %v2326_v51 = vmul.f32 %v4593_v54, %v5454_v19 }
 0x43f   :  { %v4595_v45 = vpop.eup %4594 }
 0x440   :  { %v2328_v42 = vmul.f32 %v4595_v45, %v5458_v29  ;;  %v2347_v25 = vpack.c.bf16 %v2326_v51, %v2326_v51 }
 0x441   :  { %v4597_v35 = vpop.eup %4596 }
 0x442   :  { %4391 = vmatmul.mubr.msk.bf16.vlgmr.msra.gmra.mrb[52].mxu1 %vm2160_vm3, %v2345_v56  ;;  %v2348_v19 = vpack.c.bf16 %v2328_v42, %v2328_v42 }
 0x443   :  { %4401 = vmatpush3.bf16.msra.mxu1 %v2818_v9  ;;  %4402 = vmatprep.mubr.msk.bf16.mxu1 %vm4762_vm0, %v4761_v0  ;;  %v4599_v36 = vpop.eup %4598 }
 0x444   :  { %4397 = vmatmul.mubr.msk.bf16.vlgmr.msra.gmra.mrb[56].mxu0 %vm2160_vm3, %v2346_v31  ;;  %4412 = vmatprep.subr.bf16.mxu1 %v4761_v0  ;;  %v2332_v29 = vmul.f32 %v4599_v36, %v5466_v59 }
 0x445   :  { %4407 = vmatpush3.bf16.msra.mxu0 %v5592_v24  ;;  %4408 = vmatprep.mubr.msk.bf16.mxu0 %vm4762_vm0, %v4761_v0  ;;  %v2330_v24 = vmul.f32 %v4597_v35, %v5462_v4 }
 0x446   :  { %4418 = vmatprep.subr.bf16.mxu0 %v4761_v0  ;;  %v2350_v5 = vpack.c.bf16 %v2332_v29, %v2332_v29 }
 0x447   :  { %v2349_v7 = vpack.c.bf16 %v2330_v24, %v2330_v24 }
 0x44a   :  { %4403 = vmatmul.mubr.msk.bf16.vlgmr.msra.gmra.mrb[56].mxu1 %vm2160_vm3, %v2347_v25 }
 0x44b   :  { %4413 = vmatpush3.bf16.msra.mxu1 %v5589_v14  ;;  %4414 = vmatprep.mubr.msk.bf16.mxu1 %vm4762_vm0, %v4761_v0  ;;  %v4601_v14 = vpop.eup %4600 }
 0x44c   :  { %4409 = vmatmul.mubr.msk.bf16.vlgmr.msra.gmra.mrb[60].mxu0 %vm2160_vm3, %v2348_v19  ;;  %4424 = vmatprep.subr.bf16.mxu1 %v4761_v0  ;;  %v4603_v6 = vpop.eup %4602  ;;  %v2334_v4 = vmul.f32 %v4601_v14, %v5470_v57 }
 0x44d   :  { %4419 = vmatpush3.bf16.msra.mxu0 %v5595_v3  ;;  %4420 = vmatprep.mubr.msk.bf16.mxu0 %vm4762_vm0, %v4761_v0  ;;  %v2336_v59 = vmul.f32 %v4603_v6, %v5474_v1 }
 0x44e   :  { %4430 = vmatprep.subr.bf16.mxu0 %v4761_v0  ;;  %v2351_v3 = vpack.c.bf16 %v2334_v4, %v2334_v4 }
 0x452   :  { %4415 = vmatmul.mubr.msk.bf16.vlgmr.msra.gmra.mrb[60].mxu1 %vm2160_vm3, %v2349_v7 }
 0x453   :  { %4425 = vmatpush3.bf16.msra.mxu1 %v5598_v43  ;;  %4426 = vmatprep.mubr.msk.bf16.mxu1 %vm4762_vm0, %v4761_v0  ;;  %v2352_v43 = vpack.c.bf16 %v2336_v59, %v2336_v59 }
 0x454   :  { %4421 = vmatmul.mubr.msk.bf16.vlgmr.msra.gmra.mrb[64].mxu0 %vm2160_vm3, %v2350_v5  ;;  %4436 = vmatprep.subr.bf16.mxu1 %v4761_v0 }
 0x455   :  { %4431 = vmatpush3.bf16.msra.mxu0 %v5601_v39  ;;  %4432 = vmatprep.mubr.msk.bf16.mxu0 %vm4762_vm0, %v4761_v0 }
 0x456   :  { %4444 = vmatprep.subr.bf16.mxu0 %v4761_v0 }
 0x45a   :  { %4427 = vmatmul.mubr.msk.bf16.vlgmr.msra.gmra.mrb[64].mxu1 %vm2160_vm3, %v2351_v3 }
 0x45b   :  { %4440 = vmatprep.mubr.msk.bf16.mxu1 %vm4762_vm0, %v4761_v0 }
 0x45c   :  { %4433 = vmatmul.mubr.msk.bf16.vlgmr.msra.gmra.mrb[68].mxu0 %vm2160_vm3, %v2352_v43 }
 0x45d   :  { %4448 = vmatprep.mubr.msk.bf16.mxu0 %vm4762_vm0, %v4761_v0 }
 0x4da   :  { %v2394_v57 = vpop.f32.mrb[36].mxu1 }
 0x4db   :  { %v4344_v39 = vpop.f32.mrb[37].mxu1 }
 0x4dc   :  { %v2397_v62 = vpop.f32.mrb[38].mxu1  ;;  %v2440_v26 = vpop.f32.mrb[40].mxu0 }
 0x4dd   :  { %v4345_v33 = vpop.f32.mrb[39].mxu1  ;;  %v4350_v1 = vpop.f32.mrb[41].mxu0 }
 0x4de   :  { %v2443_v60 = vpop.f32.mrb[42].mxu0 }
 0x4df   :  { %v4351_v40 = vpop.f32.mrb[43].mxu0 }
 0x4fd   :  { %v2486_v10 = vpop.f32.mrb[40].mxu1 }
 0x4fe   :  { %v3090_v48 = vcombine.low %v2394_v57, %v2486_v10  ;;  %v3091_v27 = vcombine.high %v2394_v57, %v2486_v10  ;;  %v4356_v63 = vpop.f32.mrb[41].mxu1 }
 0x4ff   :  { %v2489_v30 = vpop.f32.mrb[42].mxu1  ;;  %v2532_v32 = vpop.f32.mrb[44].mxu0 }
 0x500   :  { %v3106_v47 = vcombine.low %v2440_v26, %v2532_v32  ;;  %v3107_v52 = vcombine.high %v2440_v26, %v2532_v32  ;;  %v4357_v23 = vpop.f32.mrb[43].mxu1  ;;  %v4362_v37 = vpop.f32.mrb[45].mxu0  ;;  %v3098_v8 = vrot.slane %v3090_v48, %v5017_v53  ;;  %v3105_v22 = vrot.slane %v3091_v27, %v5017_v53 }
 0x501   :  { %v2535_v38 = vpop.f32.mrb[46].mxu0 }
 0x502   :  { %v3114_v34 = vrot.slane %v3106_v47, %v5017_v53  ;;  %v3121_v13 = vrot.slane %v3107_v52, %v5017_v53  ;;  %v4363_v15 = vpop.f32.mrb[47].mxu0 }
 0x504   :  { %v3154_v17 = vcombine.low %v3098_v8, %v3114_v34  ;;  %v3155_v2 = vcombine.high %v3098_v8, %v3114_v34  ;;  %v3170_v58 = vcombine.low %v3105_v22, %v3121_v13  ;;  %v3171_v50 = vcombine.high %v3105_v22, %v3121_v13 }
 0x505   :  { %v2578_v16 = vpop.f32.mrb[44].mxu1 }
 0x506   :  { %v3162_v46 = vrot.slane %v3154_v17, %v5042_v12  ;;  %v3169_v44 = vrot.slane %v3155_v2, %v5042_v12  ;;  %v3178_v11 = vrot.slane %v3170_v58, %v5042_v12  ;;  %v3185_v20 = vrot.slane %v3171_v50, %v5042_v12  ;;  %v4368_v55 = vpop.f32.mrb[45].mxu1 }
 0x507   :  { %v2581_v28 = vpop.f32.mrb[46].mxu1  ;;  %v2624_v18 = vpop.f32.mrb[48].mxu0 }
 0x508   :  { %v4102_v49 = vcombine.low %v3162_v46, %v3169_v44  ;;  %v4104_v21 = vcombine.high %v3162_v46, %v3169_v44  ;;  %v4106_v56 = vcombine.low %v3178_v11, %v3185_v20  ;;  %v4108_v54 = vcombine.high %v3178_v11, %v3185_v20  ;;  %v4369_v9 = vpop.f32.mrb[47].mxu1  ;;  %v4374_v31 = vpop.f32.mrb[49].mxu0 }
 0x509   :  { %v2627_v45 = vpop.f32.mrb[50].mxu0 }
 0x50a   :  { %v3370_v51 = vrot.slane %v4102_v49, %v5017_v53  ;;  %v3386_v41 = vrot.slane %v4104_v21, %v5017_v53  ;;  %v3402_v42 = vrot.slane %v4106_v56, %v5017_v53  ;;  %v3418_v61 = vrot.slane %v4108_v54, %v5017_v53  ;;  %v4375_v25 = vpop.f32.mrb[51].mxu0 }
 0x50c   :  { %v3427_v35 = vcombine.high %v3370_v51, %v3386_v41  ;;  %v3459_v19 = vcombine.high %v3402_v42, %v3418_v61  ;;  %v3426_v36 = vcombine.low %v3370_v51, %v3386_v41  ;;  %v3458_v24 = vcombine.low %v3402_v42, %v3418_v61 }
 0x50d   :  { %v2670_v29 = vpop.f32.mrb[48].mxu1 }
 0x50e   :  { %v3122_v7 = vcombine.low %v2578_v16, %v2670_v29  ;;  %v3123_v14 = vcombine.high %v2578_v16, %v2670_v29  ;;  %v4380_v5 = vpop.f32.mrb[49].mxu1  ;;  %v5711_v6 = vrot.slane %v3427_v35, %v5042_v12  ;;  %v5714_v4 = vrot.slane %v3459_v19, %v5042_v12 }
 0x50f   :  { %v2673_v59 = vpop.f32.mrb[50].mxu1  ;;  %v2716_v3 = vpop.f32.mrb[52].mxu0  ;;  %v5717_v43 = vrot.slane %v3426_v36, %v5042_v12  ;;  %v5720_v57 = vrot.slane %v3458_v24, %v5042_v12 }
 0x510   :  { %v3138_v39 = vcombine.low %v2624_v18, %v2716_v3  ;;  %v3139_v62 = vcombine.high %v2624_v18, %v2716_v3  ;;  %v4381_v26 = vpop.f32.mrb[51].mxu1  ;;  %v4386_v33 = vpop.f32.mrb[53].mxu0  ;;  %v3492_v60 = vcombine.low %v5711_v6, %v5714_v4  ;;  %v3493_v48 = vcombine.high %v5711_v6, %v5714_v4 }
 0x511   :  { %v2719_v1 = vpop.f32.mrb[54].mxu0  ;;  %v3490_v40 = vcombine.low %v5717_v43, %v5720_v57  ;;  %v3491_v10 = vcombine.high %v5717_v43, %v5720_v57  ;;  %v3130_v27 = vrot.slane %v3122_v7, %v5017_v53  ;;  %v3137_v63 = vrot.slane %v3123_v14, %v5017_v53 }
 0x512   :  { %v3146_v30 = vrot.slane %v3138_v39, %v5017_v53  ;;  %v3153_v32 = vrot.slane %v3139_v62, %v5017_v53  ;;  %v4387_v47 = vpop.f32.mrb[55].mxu0 }
 0x514   :  { %v3186_v52 = vcombine.low %v3130_v27, %v3146_v30  ;;  %v3187_v23 = vcombine.high %v3130_v27, %v3146_v30  ;;  %v3202_v37 = vcombine.low %v3137_v63, %v3153_v32  ;;  %v3203_v38 = vcombine.high %v3137_v63, %v3153_v32 }
 0x515   :  { %v2762_v8 = vpop.f32.mrb[52].mxu1 }
 0x516   :  { %v3194_v22 = vrot.slane %v3186_v52, %v5042_v12  ;;  %v3201_v34 = vrot.slane %v3187_v23, %v5042_v12  ;;  %v3210_v13 = vrot.slane %v3202_v37, %v5042_v12  ;;  %v3217_v15 = vrot.slane %v3203_v38, %v5042_v12  ;;  %v4392_v17 = vpop.f32.mrb[53].mxu1 }
 0x517   :  { %v2765_v2 = vpop.f32.mrb[54].mxu1  ;;  %v2808_v58 = vpop.f32.mrb[56].mxu0 }
 0x518   :  { %v4103_v50 = vcombine.low %v3194_v22, %v3201_v34  ;;  %v4105_v16 = vcombine.high %v3194_v22, %v3201_v34  ;;  %v4107_v46 = vcombine.low %v3210_v13, %v3217_v15  ;;  %v4109_v44 = vcombine.high %v3210_v13, %v3217_v15  ;;  %v4393_v11 = vpop.f32.mrb[55].mxu1  ;;  %v4398_v20 = vpop.f32.mrb[57].mxu0 }
 0x519   :  { %v2811_v55 = vpop.f32.mrb[58].mxu0 }
 0x51a   :  { %v3377_v28 = vrot.slane %v4103_v50, %v5017_v53  ;;  %v3393_v18 = vrot.slane %v4105_v16, %v5017_v53  ;;  %v3409_v49 = vrot.slane %v4107_v46, %v5017_v53  ;;  %v3425_v21 = vrot.slane %v4109_v44, %v5017_v53  ;;  %v4399_v56 = vpop.f32.mrb[59].mxu0 }
 0x51c   :  { %v3442_v54 = vcombine.low %v3377_v28, %v3393_v18  ;;  %v3474_v9 = vcombine.low %v3409_v49, %v3425_v21  ;;  %v3443_v31 = vcombine.high %v3377_v28, %v3393_v18  ;;  %v3475_v45 = vcombine.high %v3409_v49, %v3425_v21 }
 0x51d   :  { %v2854_v51 = vpop.f32.mrb[56].mxu1 }
 0x51e   :  { %v3226_v41 = vcombine.low %v2762_v8, %v2854_v51  ;;  %v3227_v42 = vcombine.high %v2762_v8, %v2854_v51  ;;  %v4404_v61 = vpop.f32.mrb[57].mxu1  ;;  %v5743_v25 = vrot.slane %v3442_v54, %v5042_v12  ;;  %v5746_v35 = vrot.slane %v3474_v9, %v5042_v12 }
 0x51f   :  { %v2857_v19 = vpop.f32.mrb[58].mxu1  ;;  %v2900_v36 = vpop.f32.mrb[60].mxu0  ;;  %v5749_v24 = vrot.slane %v3443_v31, %v5042_v12  ;;  %v5752_v29 = vrot.slane %v3475_v45, %v5042_v12 }
 0x520   :  { %v3242_v7 = vcombine.low %v2808_v58, %v2900_v36  ;;  %v3243_v14 = vcombine.high %v2808_v58, %v2900_v36  ;;  %v4405_v5 = vpop.f32.mrb[59].mxu1  ;;  %v4410_v59 = vpop.f32.mrb[61].mxu0  ;;  %v3495_v39 = vcombine.high %v5743_v25, %v5746_v35  ;;  %v3494_v62 = vcombine.low %v5743_v25, %v5746_v35 }
 0x521   :  { %v2903_v3 = vpop.f32.mrb[62].mxu0  ;;  %v3497_v26 = vcombine.high %v5749_v24, %v5752_v29  ;;  %v3496_v33 = vcombine.low %v5749_v24, %v5752_v29  ;;  %v3234_v1 = vrot.slane %v3226_v41, %v5017_v53  ;;  %v3241_v27 = vrot.slane %v3227_v42, %v5017_v53 }
 0x522   :  { %v3250_v63 = vrot.slane %v3242_v7, %v5017_v53  ;;  %v3257_v30 = vrot.slane %v3243_v14, %v5017_v53  ;;  %v4411_v32 = vpop.f32.mrb[63].mxu0 }
 0x524   :  { %v3290_v47 = vcombine.low %v3234_v1, %v3250_v63  ;;  %v3291_v52 = vcombine.high %v3234_v1, %v3250_v63  ;;  %v3306_v23 = vcombine.low %v3241_v27, %v3257_v30  ;;  %v3307_v37 = vcombine.high %v3241_v27, %v3257_v30 }
 0x525   :  { %v2946_v38 = vpop.f32.mrb[60].mxu1 }
 0x526   :  { %v3298_v8 = vrot.slane %v3290_v47, %v5042_v12  ;;  %v3305_v22 = vrot.slane %v3291_v52, %v5042_v12  ;;  %v3314_v34 = vrot.slane %v3306_v23, %v5042_v12  ;;  %v3321_v13 = vrot.slane %v3307_v37, %v5042_v12  ;;  %v4416_v15 = vpop.f32.mrb[61].mxu1 }
 0x527   :  { %v2949_v17 = vpop.f32.mrb[62].mxu1  ;;  %v2992_v2 = vpop.f32.mrb[64].mxu0 }
 0x528   :  { %v4110_v58 = vcombine.low %v3298_v8, %v3305_v22  ;;  %v4112_v50 = vcombine.high %v3298_v8, %v3305_v22  ;;  %v4114_v16 = vcombine.low %v3314_v34, %v3321_v13  ;;  %v4116_v46 = vcombine.high %v3314_v34, %v3321_v13  ;;  %v4417_v44 = vpop.f32.mrb[63].mxu1  ;;  %v4422_v11 = vpop.f32.mrb[65].mxu0 }
 0x529   :  { %v2995_v20 = vpop.f32.mrb[66].mxu0  ;;  %v4532_v11 = vld [vmem:[#allocation7] sm:$0xff]  }
 0x52a   :  { %v3506_v55 = vrot.slane %v4110_v58, %v5017_v53  ;;  %v3522_v28 = vrot.slane %v4112_v50, %v5017_v53  ;;  %v3538_v18 = vrot.slane %v4114_v16, %v5017_v53  ;;  %v3554_v49 = vrot.slane %v4116_v46, %v5017_v53  ;;  %v4423_v21 = vpop.f32.mrb[67].mxu0  ;;  %4437 = vmatpush3.bf16.msra.mxu1 %v4532_v11 }
 0x52b   :  { %4438 = vmatprep.subr.bf16.mxu1 %v4761_v0 }
 0x52c   :  { %v3563_v56 = vcombine.high %v3506_v55, %v3522_v28  ;;  %v3595_v54 = vcombine.high %v3538_v18, %v3554_v49  ;;  %v3562_v9 = vcombine.low %v3506_v55, %v3522_v28  ;;  %v3594_v31 = vcombine.low %v3538_v18, %v3554_v49 }
 0x52d   :  { %v3038_v45 = vpop.f32.mrb[64].mxu1 }
 0x52e   :  { %v3258_v51 = vcombine.low %v2946_v38, %v3038_v45  ;;  %v3259_v41 = vcombine.high %v2946_v38, %v3038_v45  ;;  %v4428_v42 = vpop.f32.mrb[65].mxu1  ;;  %v3577_v61 = vrot.slane %v3563_v56, %v5042_v12  ;;  %v3609_v19 = vrot.slane %v3595_v54, %v5042_v12 }
 0x52f   :  { %v3041_v36 = vpop.f32.mrb[66].mxu1  ;;  %v3084_v7 = vpop.f32.mrb[68].mxu0  ;;  %v5777_v14 = vrot.slane %v3562_v9, %v5042_v12  ;;  %v5780_v5 = vrot.slane %v3594_v31, %v5042_v12 }
 0x530   :  { %v3274_v59 = vcombine.low %v2992_v2, %v3084_v7  ;;  %v3275_v3 = vcombine.high %v2992_v2, %v3084_v7  ;;  %v4429_v1 = vpop.f32.mrb[67].mxu1  ;;  %v4434_v27 = vpop.f32.mrb[69].mxu0  ;;  %v3628_v30 = vcombine.low %v3577_v61, %v3609_v19  ;;  %v3629_v52 = vcombine.high %v3577_v61, %v3609_v19 }
 0x531   :  { %v3087_v63 = vpop.f32.mrb[70].mxu0  ;;  %v3627_v32 = vcombine.high %v5777_v14, %v5780_v5  ;;  %v3626_v47 = vcombine.low %v5777_v14, %v5780_v5  ;;  %v3266_v23 = vrot.slane %v3258_v51, %v5017_v53  ;;  %v3273_v37 = vrot.slane %v3259_v41, %v5017_v53  ;;  %v4533_v41 = vld [vmem:[#allocation7 + $0x8] sm:$0xff]  }
 0x532   :  { %v3282_v38 = vrot.slane %v3274_v59, %v5017_v53  ;;  %v3289_v8 = vrot.slane %v3275_v3, %v5017_v53  ;;  %v4435_v22 = vpop.f32.mrb[71].mxu0  ;;  %v4496_v34 = vpack.i.bf16 %v3628_v30, %v3492_v60  ;;  %v4501_v15 = vpack.i.bf16 %v3629_v52, %v3493_v48  ;;  %4439 = vmatpush3.bf16.msra.mxu1 %v4533_v41 }
 0x533   :  { %v4491_v13 = vpack.i.bf16 %v3627_v32, %v3491_v10  ;;  %4452 = vmatprep.subr.bf16.mxu1 %v4761_v0 }
 0x534   :  { %v3322_v17 = vcombine.low %v3266_v23, %v3282_v38  ;;  %v3323_v2 = vcombine.high %v3266_v23, %v3282_v38  ;;  %v3338_v58 = vcombine.low %v3273_v37, %v3289_v8  ;;  %v3339_v50 = vcombine.high %v3273_v37, %v3289_v8  ;;  %4497 = vrot.lane.b32.xlu1 %v4496_v34, %s4773_s29 }
 0x535   :  { %4492 = vrot.lane.b32.xlu0 %v4491_v13, %s4758_s27  ;;  %s4775_s27 = smov 20  }
 0x536   :  { %v3330_v16 = vrot.slane %v3322_v17, %v5042_v12  ;;  %v3337_v60 = vrot.slane %v3323_v2, %v5042_v12  ;;  %v3346_v46 = vrot.slane %v3338_v58, %v5042_v12  ;;  %v3353_v10 = vrot.slane %v3339_v50, %v5042_v12 }
 0x538   :  { %v4111_v44 = vcombine.low %v3330_v16, %v3337_v60  ;;  %v4113_v6 = vcombine.high %v3330_v16, %v3337_v60  ;;  %v4115_v4 = vcombine.low %v3346_v46, %v3353_v10  ;;  %v4117_v48 = vcombine.high %v3346_v46, %v3353_v10  ;;  %4502 = vrot.lane.b32.xlu1 %v4501_v15, %s4774_s0  ;;  %v4118_v10 = vld [vmem:[#allocation8] ss:$0 sm:$0xff] }
 0x53a   :  { %v3513_v20 = vrot.slane %v4111_v44, %v5017_v53  ;;  %v3529_v55 = vrot.slane %v4113_v6, %v5017_v53  ;;  %v3545_v28 = vrot.slane %v4115_v4, %v5017_v53  ;;  %v3561_v18 = vrot.slane %v4117_v48, %v5017_v53 }
 0x53c   :  { %v3578_v49 = vcombine.low %v3513_v20, %v3529_v55  ;;  %v3610_v21 = vcombine.low %v3545_v28, %v3561_v18  ;;  %v3579_v56 = vcombine.high %v3513_v20, %v3529_v55  ;;  %v3611_v54 = vcombine.high %v3545_v28, %v3561_v18  ;;  %v4612_v55 = vld [vmem:[%s5929_s21] sm:$0xff] }
 0x53e   :  { %v3586_v9 = vrot.slane %v3578_v49, %v5042_v12  ;;  %v3618_v31 = vrot.slane %v3610_v21, %v5042_v12  ;;  %v3593_v45 = vrot.slane %v3579_v56, %v5042_v12  ;;  %v3625_v51 = vrot.slane %v3611_v54, %v5042_v12  ;;  %v4613_v49 = vld [vmem:[%s5929_s21 + $0x8] sm:$0xff] }
 0x540   :  { %v3631_v42 = vcombine.high %v3586_v9, %v3618_v31  ;;  %v3630_v61 = vcombine.low %v3586_v9, %v3618_v31  ;;  %v3633_v19 = vcombine.high %v3593_v45, %v3625_v51  ;;  %v3632_v53 = vcombine.low %v3593_v45, %v3625_v51 }
 0x542   :  { %v4511_v36 = vpack.i.bf16 %v3631_v42, %v3495_v39  ;;  %v4506_v7 = vpack.i.bf16 %v3630_v61, %v3494_v62  ;;  %v4521_v59 = vpack.i.bf16 %v3633_v19, %v3497_v26  ;;  %v4516_v12 = vpack.i.bf16 %v3632_v53, %v3496_v33 }
 0x544   :  { %4512 = vrot.lane.b32.xlu1 %v4511_v36, %s4775_s27  ;;  %4507 = vrot.lane.b32.xlu0 %v4506_v7, %s4776_s5  ;;  %v4534_v36 = vld [vmem:[%s5918_s11] sm:$0xff]   ;;  %v4535_v7 = vld [vmem:[%s5918_s11 + $0x8] sm:$0xff]  }
 0x545   :  { %4445 = vmatpush3.bf16.msra.mxu0 %v4534_v36  ;;  %v4135_v36 = vld [vmem:[%s5923_s16] ss:$0 sm:$0xff] }
 0x546   :  { %4446 = vmatprep.subr.bf16.mxu0 %v4761_v0 }
 0x548   :  { %4522 = vrot.lane.b32.xlu1 %v4521_v59, %s4777_s30  ;;  %4517 = vrot.lane.b32.xlu0 %v4516_v12, %s4778_s18  ;;  %v4536_v59 = vld [vmem:[%s5920_s13] sm:$0xff]   ;;  %v4537_v12 = vld [vmem:[%s5920_s13 + $0x8] sm:$0xff]   ;;  %s4779_s18 = smov [#allocation11]  }
 0x549   :  { %4447 = vmatpush3.bf16.msra.mxu0 %v4535_v7  ;;  %s4032_s19 = sshll.u32 %s4779_s18, 4  ;;  %s4033_s19 = int_to_ptr.vmem [resolvable:$true] %s4032_s19 }
 0x54a   :  { %s4724_s1 = scalar_lea.vmem %s4033_s19, 256  ;;  %p4729_p13 = scmp.lt.s32.totalorder %s4033_s19, %s4033_s19 }
 0x54b   :  { %p4725_p12 = scmp.ne.s32.totalorder %s4033_s19, %s4724_s1  ;;  %p4730_p0 = scmp.lt.s32.totalorder %s4724_s1, %s4724_s1 }
 0x54d   :  { %p4731_p1 = por %p4730_p0, %p4729_p13 }
 0x54f   :  { %p4732_p2 = pnand %p4731_p1, %p4725_p12 }
 0x5a6   :  { %v4498_v25 = vpop.permute.xlu1 %4497 }
 0x5a7   :  { %v4493_v35 = vpop.permute.xlu0 %4492  ;;  %v4500_v26 = vunpack.i.h.bf16 %v4498_v25  ;;  %v4499_v1 = vunpack.i.l.bf16 %v4498_v25 }
 0x5a8   :  { %v4495_v39 = vunpack.i.h.bf16 %v4493_v35  ;;  %v4494_v62 = vunpack.i.l.bf16 %v4493_v35 }
 0x5aa   :  { %v4503_v3 = vpop.permute.xlu1 %4502  ;;  %v3690_v24 = vsel %vm1423_vm2, %v3490_v40, %v4494_v62  ;;  %v3691_v29 = vsel %vm1423_vm2, %v3626_v47, %v4495_v39 }
 0x5ab   :  { %v4505_v33 = vunpack.i.h.bf16 %v4503_v3  ;;  %v4504_v27 = vunpack.i.l.bf16 %v4503_v3  ;;  %v3692_v32 = vsel %vm2160_vm3, %v3690_v24, %v4499_v1  ;;  %v3693_v52 = vsel %vm2160_vm3, %v3691_v29, %v4500_v26  ;;  %v4122_v29 = vld [vmem:[#allocation10] ss:$0 sm:$0xff] }
 0x5ad   :  { %v3695_v43 = vsel %vm3694_vm5, %v3692_v32, %v4504_v27  ;;  %v3696_v57 = vsel %vm3694_vm5, %v3693_v52, %v4505_v33 }
 0x5b6   :  { %v4513_v63 = vpop.permute.xlu1 %4512  ;;  %v4508_v30 = vpop.permute.xlu0 %4507 }
 0x5b7   :  { %v4510_v23 = vunpack.i.h.bf16 %v4508_v30  ;;  %v4509_v37 = vunpack.i.l.bf16 %v4508_v30  ;;  %v4515_v40 = vunpack.i.h.bf16 %v4513_v63  ;;  %v4514_v38 = vunpack.i.l.bf16 %v4513_v63  ;;  %v4123_v30 = vld [vmem:[%s5917_s10] ss:$0 sm:$0xff] }
 0x5b9   :  { %v3699_v8 = vsel %vm3697_vm6, %v3696_v57, %v4510_v23  ;;  %v3698_v14 = vsel %vm3697_vm6, %v3695_v43, %v4509_v37  ;;  %v4538_v43 = vld [vmem:[%s5920_s13 + $0x10] sm:$0xff]   ;;  %v4539_v57 = vld [vmem:[%s5920_s13 + $0x18] sm:$0xff]  }
 0x5ba   :  { %v4523_v5 = vpop.permute.xlu1 %4522  ;;  %v4518_v47 = vpop.permute.xlu0 %4517  ;;  %v3701_v17 = vsel %vm3700_vm7, %v3698_v14, %v4514_v38  ;;  %v3702_v2 = vsel %vm3700_vm7, %v3699_v8, %v4515_v40  ;;  %v4124_v40 = vld [vmem:[%s5919_s12] ss:$0 sm:$0xff] }
 0x5bb   :  { %v4525_v22 = vunpack.i.h.bf16 %v4523_v5  ;;  %v4524_v34 = vunpack.i.l.bf16 %v4523_v5  ;;  %v4520_v13 = vunpack.i.h.bf16 %v4518_v47  ;;  %v4519_v15 = vunpack.i.l.bf16 %v4518_v47 }
 0x5bd   :  { %v3704_v58 = vsel %vm3703_vm8, %v3701_v17, %v4519_v15  ;;  %v3705_v50 = vsel %vm3703_vm8, %v3702_v2, %v4520_v13 }
 0x5be   :  { %v3707_v16 = vsel %vm3706_vm9, %v3704_v58, %v4524_v34  ;;  %v3708_v60 = vsel %vm3706_vm9, %v3705_v50, %v4525_v22 }
 0x5bf   :  { %v3709_v46 = vpack.c.bf16 %v3708_v60, %v3707_v16 }
 0x5c1   :  { %4441 = vmatmul.mubr.msk.bf16.vlgmr.msra.gmra.mrb[68].mxu1 %vm146_vm1, %v3709_v46 }
 0x5c2   :  { %4460 = vmatprep.mubr.msk.bf16.mxu1 %vm4762_vm0, %v4761_v0  ;;  %4453 = vmatpush3.bf16.msra.mxu1 %v4536_v59 }
 0x5c3   :  { %4454 = vmatprep.subr.bf16.mxu1 %v4761_v0 }
 0x5c6   :  { %4455 = vmatpush3.bf16.msra.mxu1 %v4537_v12 }
 0x5c7   :  { %4456 = vmatprep.subr.bf16.mxu1 %v4761_v0 }
 0x5ca   :  { %4457 = vmatpush3.bf16.msra.mxu1 %v4538_v43 }
 0x5cb   :  { %4458 = vmatprep.subr.bf16.mxu1 %v4761_v0  ;;  %v4128_v0 = vld [vmem:[%s5921_s14] ss:$0 sm:$0xff] }
 0x5ce   :  { %4459 = vmatpush3.bf16.msra.mxu1 %v4539_v57 }
 0x694   :  { %v3770_v44 = vpop.f32.mrb[68].mxu1 }
 0x695   :  { %v3771_v6 = vadd.f32 %v4118_v10, %v3770_v44  ;;  %v4442_v4 = vpop.f32.mrb[69].mxu1 }
 0x696   :  { %v3773_v48 = vpop.f32.mrb[70].mxu1 }
 0x697   :  { %v3774_v11 = vadd.f32 %v4118_v10, %v3773_v48  ;;  %v4443_v20 = vpop.f32.mrb[71].mxu1  ;;  %v3777_v28 = vadd.f32 %v4612_v55, %v3771_v6 }
 0x699   :  { %v3781_v18 = vsel %vm146_vm1, %v3777_v28, 0.0  ;;  %v3778_v21 = vadd.f32 %v4613_v49, %v3774_v11 }
 0x69a   :  { %3782 = vadd.xlane.f32.xlu0 %v3781_v18 }
 0x69b   :  { %v3784_v56 = vsel %vm146_vm1, %v3778_v21, 0.0 }
 0x69c   :  { %3785 = vadd.xlane.f32.xlu1 %v3784_v56 }
 0x727   :  { %v3783_v54 = vpop.xlane.xlu0 %3782 }
 0x728   :  { %v3788_v9 = vmul.f32 0.03125, %v3783_v54 }
 0x729   :  { %v3786_v31 = vpop.xlane.xlu1 %3785 }
 0x72a   :  { %v3790_v45 = vsub.f32 %v3777_v28, %v3788_v9  ;;  %v3789_v51 = vmul.f32 0.03125, %v3786_v31 }
 0x72c   :  { %v3791_v41 = vsub.f32 %v3778_v21, %v3789_v51  ;;  %v3792_v42 = vmul.f32 %v3790_v45, %v3790_v45 }
 0x72e   :  { %v3794_v61 = vsel %vm146_vm1, %v3792_v42, 0.0  ;;  %v3793_v19 = vmul.f32 %v3791_v41, %v3791_v41 }
 0x72f   :  { %3795 = vadd.xlane.f32.xlu0 %v3794_v61  ;;  %v4134_v61 = vld [vmem:[%s5922_s15] ss:$0 sm:$0xff] }
 0x730   :  { %v3797_v53 = vsel %vm146_vm1, %v3793_v19, 0.0 }
 0x733   :  { %3798 = vadd.xlane.f32.xlu0 %v3797_v53 }
 0x7bc   :  { %v3796_v25 = vpop.xlane.xlu0 %3795 }
 0x7bd   :  { %v3800_v35 = vmul.f32 0.03125, %v3796_v25 }
 0x7bf   :  { %v3802_v39 = vadd.f32 1e-05, %v3800_v35 }
 0x7c0   :  { %v3799_v62 = vpop.xlane.xlu0 %3798 }
 0x7c1   :  { %4604 = vrsqrt.f32 %v3802_v39  ;;  %v3801_v3 = vmul.f32 0.03125, %v3799_v62 }
 0x7c3   :  { %v3803_v26 = vadd.f32 1e-05, %v3801_v3 }
 0x7c5   :  { %4606 = vrsqrt.f32 %v3803_v26 }
 0x7cb   :  { %v4605_v1 = vpop.eup %4604 }
 0x7cc   :  { %v3806_v24 = vmul.f32 %v4605_v1, %v3790_v45 }
 0x7ce   :  { %v3814_v27 = vmul.f32 %v4122_v29, %v3806_v24 }
 0x7cf   :  { %v4607_v33 = vpop.eup %4606 }
 0x7d0   :  { %v3807_v63 = vmul.f32 %v4607_v33, %v3791_v41  ;;  %v3822_v52 = vadd.f32 %v4123_v30, %v3814_v27 }
 0x7d2   :  { %v3815_v32 = vmul.f32 %v4122_v29, %v3807_v63 }
 0x7d4   :  { %v3823_v23 = vadd.f32 %v4123_v30, %v3815_v32 }
 0x7d6   :  { %v3824_v37 = vpack.c.bf16 %v3823_v23, %v3822_v52 }
 0x7d8   :  { %4449 = vmatmul.mubr.msk.bf16.vlgmr.msra.gmra.mrb[72].mxu0 %vm146_vm1, %v3824_v37 }
 0x8ab   :  { %v3885_v38 = vpop.f32.mrb[72].mxu0 }
 0x8ac   :  { %v3886_v8 = vadd.f32 %v4124_v40, %v3885_v38  ;;  %v4450_v14 = vpop.f32.mrb[73].mxu0 }
 0x8ad   :  { %v3888_v5 = vpop.f32.mrb[74].mxu0 }
 0x8ae   :  { %v3889_v47 = vadd.f32 %v4124_v40, %v3888_v5  ;;  %v4451_v22 = vpop.f32.mrb[75].mxu0  ;;  %v3892_v34 = vmax.f32 %v3886_v8, 0.0 }
 0x8b0   :  { %v3893_v13 = vmax.f32 %v3889_v47, 0.0 }
 0x8b2   :  { %v3894_v15 = vpack.c.bf16 %v3893_v13, %v3892_v34 }
 0x8b4   :  { %4461 = vmatmul.mubr.msk.bf16.vlgmr.msra.gmra.mrb[72].mxu1 %vm3934_vm10, %v3894_v15 }
 0x987   :  { %v3972_v17 = vpop.f32.mrb[72].mxu1 }
 0x988   :  { %v3973_v2 = vadd.f32 %v4128_v0, %v3972_v17  ;;  %v4462_v58 = vpop.f32.mrb[73].mxu1 }
 0x989   :  { %v3975_v50 = vpop.f32.mrb[74].mxu1 }
 0x98a   :  { %v3976_v16 = vadd.f32 %v4128_v0, %v3975_v50  ;;  %v4463_v60 = vpop.f32.mrb[75].mxu1  ;;  %v3979_v46 = vadd.f32 %v3973_v2, %v3822_v52 }
 0x98c   :  { %v3983_v10 = vsel %vm146_vm1, %v3979_v46, 0.0  ;;  %v3980_v44 = vadd.f32 %v3976_v16, %v3823_v23 }
 0x98d   :  { %3984 = vadd.xlane.f32.xlu1 %v3983_v10 }
 0x98e   :  { %v3986_v6 = vsel %vm146_vm1, %v3980_v44, 0.0 }
 0x98f   :  { %3987 = vadd.xlane.f32.xlu0 %v3986_v6 }
 0xa1a   :  { %v3985_v4 = vpop.xlane.xlu1 %3984 }
 0xa1b   :  { %v3989_v48 = vmul.f32 0.03125, %v3985_v4 }
 0xa1c   :  { %v3988_v11 = vpop.xlane.xlu0 %3987 }
 0xa1d   :  { %v3991_v20 = vsub.f32 %v3979_v46, %v3989_v48  ;;  %v3990_v55 = vmul.f32 0.03125, %v3988_v11 }
 0xa1f   :  { %v3992_v28 = vsub.f32 %v3980_v44, %v3990_v55  ;;  %v3993_v18 = vmul.f32 %v3991_v20, %v3991_v20 }
 0xa21   :  { %v3995_v49 = vsel %vm146_vm1, %v3993_v18, 0.0  ;;  %v3994_v21 = vmul.f32 %v3992_v28, %v3992_v28 }
 0xa22   :  { %3996 = vadd.xlane.f32.xlu1 %v3995_v49 }
 0xa23   :  { %v3998_v56 = vsel %vm146_vm1, %v3994_v21, 0.0 }
 0xa24   :  { %3999 = vadd.xlane.f32.xlu0 %v3998_v56 }
 0xaaf   :  { %v3997_v54 = vpop.xlane.xlu1 %3996 }
 0xab0   :  { %v4001_v9 = vmul.f32 0.03125, %v3997_v54 }
 0xab1   :  { %v4000_v31 = vpop.xlane.xlu0 %3999 }
 0xab2   :  { %v4003_v45 = vadd.f32 1e-05, %v4001_v9  ;;  %v4002_v51 = vmul.f32 0.03125, %v4000_v31 }
 0xab4   :  { %4608 = vrsqrt.f32 %v4003_v45  ;;  %v4004_v41 = vadd.f32 1e-05, %v4002_v51 }
 0xab6   :  { %4610 = vrsqrt.f32 %v4004_v41 }
 0xabe   :  { %v4609_v42 = vpop.eup %4608 }
 0xabf   :  { %v4007_v19 = vmul.f32 %v4609_v42, %v3991_v20 }
 0xac0   :  { %v4611_v53 = vpop.eup %4610 }
 0xac1   :  { %v4015_v7 = vmul.f32 %v4134_v61, %v4007_v19  ;;  %v4008_v59 = vmul.f32 %v4611_v53, %v3992_v28 }
 0xac3   :  { %v4016_v12 = vmul.f32 %v4134_v61, %v4008_v59  ;;  %v4023_v25 = vadd.f32 %v4135_v36, %v4015_v7 }
 0xac5   :  { %v4024_v35 = vadd.f32 %v4135_v36, %v4016_v12  ;;  %4025 = vst.msk [vmem:[#allocation11] sm:$0xff] %vm146_vm1, %v4023_v25 }
 0xac7   :  { %4026 = vst.msk [vmem:[#allocation11 + $0x8] sm:$0xff] %vm146_vm1, %v4024_v35 }
 0xac8   :  { %4735 = shalt.err (!%p4732_p2)
}
 0xac9   :  { %s4736_s25 = scalar_lea.hbm %s5924_s17, 256 }
 0xaca   :  { %p4737_p3 = scmp.ne.s32.totalorder %s5924_s17, %s4736_s25  ;;  %p4740_p4 = scmp.lt.u32.totalorder %s4736_s25, %s5924_s17 }
 0xacc   :  { %p4742_p5 = pnand %p4740_p4, %p4737_p3 }
 0xace   :  { %4745 = shalt.err (!%p4742_p5)
}
 0xacf   :  { %s4780_s24 = smov 128  }
 0xad0   :  { %4038 = dma.vmem_to_hbm [thread:$0]  %s4033_s19, 256, %s5924_s17, [#allocation4], %s4780_s24, %s4780_s24, %s4773_s29  }
 0xad1   :  { %4752 = dma.done.wait [#allocation4], 256  }
 0xad2   :  { %4753 = vsyncadd [#allocation4], 4294967040 }
 0xad3   :  { %4042 = vsyncpa [#allocation3], 1 }
 0xad4   :  { %4043 = vsyncpa [#allocation6], 1 }
 0xad5   :  { %4044 = vsyncpa [#allocation9], 1 }
 0xad6   :  { %4045 = vsyncpa [#allocation4], 1 }

</bundles_post_ra>
